<compile_context>
chip_gen: v6e
topology: v6e:2x2x1
jax: 0.10.0
libtpu: 0.0.40
codegen_flags: <defaults>
</compile_context>

<pallas_src>
import jax
import jax.numpy as jnp
from jax import lax
from jax.experimental import pallas as pl
from jax.experimental.pallas import tpu as pltpu

# Small versions of the PyTorch defaults (HIDDEN_SIZE=300, MAX_LENGTH=600, BATCH=50)
HIDDEN_SIZE = 32   # hidden_size
EMBED_DIM   = 32   # output_size (EMBEDDING_DIM)
MAX_LENGTH  = 64   # max_length
BATCH_SIZE  = 8    # batch_size
ENC_LEN     = 16   # actual encoder sequence length (< MAX_LENGTH)

_LANE = 128


def _round_up(x, m):
    return (x + m - 1) // m * m


def _pick_steps_per_block(T, max_u=8):
    """Largest divisor of T that is <= max_u (decode steps fused per grid iter)."""
    for u in range(min(T, max_u), 0, -1):
        if T % u == 0:
            return u
    return 1


def _attn_decoder_kernel(x_ref, h0_ref, c0_ref, enc_ref,
                         wxc_ref, wac_ref, ba_ref,
                         wca_ref, bc_ref,
                         wih_ref, whh_ref, bg_ref,
                         wout_ref, bout_ref,
                         out_ref, attw_ref, hfin_ref, cfin_ref):
    U = x_ref.shape[0]          # decode steps fused in this grid iteration
    Lp = ba_ref.shape[1]        # padded attention width (multiple of 128)
    Hp = hfin_ref.shape[1]      # padded hidden width    (multiple of 128)
    Lk = enc_ref.shape[1]       # padded encoder length  (multiple of 128, <= Lp)
    bf16 = jnp.bfloat16

    # Seed the carried (h, c) state into the resident output blocks once.
    @pl.when(pl.program_id(0) == 0)
    def _seed_state():
        hfin_ref[...] = h0_ref[...]
        cfin_ref[...] = c0_ref[...]

    def step(u, carry):
        h, c = carry                                    # (B, Hp) f32; padded lanes are 0
        x_b = x_ref[u].astype(bf16)                     # (B, Ep)

        # One MXU dot for both x-projections: [attn x-part | attn_combine x-part].
        xproj = jnp.dot(x_b, wxc_ref[...],
                        preferred_element_type=jnp.float32)        # (B, Lp + Hp)

        # attn(cat(x, c)); F.softmax(..., dim=1) on (1,B,L) == softmax over BATCH.
        attn_logits = (xproj[:, :Lp]
                       + jnp.dot(c.astype(bf16), wac_ref[...],
                                 preferred_element_type=jnp.float32)
                       + ba_ref[...])                              # (B, Lp)
        m = jnp.max(attn_logits, axis=0, keepdims=True)
        e = jnp.exp(attn_logits - m)
        attn_w = e * pl.reciprocal(jnp.sum(e, axis=0, keepdims=True), approx=True)
        attw_ref[u] = attn_w                                       # lane-dense store

        # bmm(attn_w, enc) on the MXU: batch B, contract padded encoder length.
        # Zero-padded encoder rows kill the garbage attention columns > L_enc.
        aw = attn_w[:, :Lk].astype(bf16)[:, None, :]               # (B, 1, Lk)
        attn_applied = lax.dot_general(
            aw, enc_ref[...],
            dimension_numbers=(((2,), (1,)), ((0,), (0,))),
            preferred_element_type=jnp.float32)[:, 0, :]           # (B, Hp) f32

        # attn_combine(cat(x, attn_applied)) + ReLU (pre-split weights, no concat).
        lstm_in = jnp.maximum(
            xproj[:, Lp:]
            + jnp.dot(attn_applied.astype(bf16), wca_ref[...],
                      preferred_element_type=jnp.float32)
            + bc_ref[...], 0.0)                                    # (B, Hp)

        # Single-step LSTM (PyTorch gate order i, f, g, o). Gate axis is 4 x Hp so
        # every slice is 128-lane aligned; b_ih + b_hh pre-summed in the wrapper.
        gates = (jnp.dot(lstm_in.astype(bf16), wih_ref[...],
                         preferred_element_type=jnp.float32)
                 + jnp.dot(h.astype(bf16), whh_ref[...],
                           preferred_element_type=jnp.float32)
                 + bg_ref[...])                                    # (B, 4*Hp)
        i_g = jax.nn.sigmoid(gates[:, 0 * Hp:1 * Hp])
        f_g = jax.nn.sigmoid(gates[:, 1 * Hp:2 * Hp])
        g_g = jnp.tanh(gates[:, 2 * Hp:3 * Hp])
        o_g = jax.nn.sigmoid(gates[:, 3 * Hp:4 * Hp])
        c_new = f_g * c + i_g * g_g                                # padded lanes stay 0
        h_new = o_g * jnp.tanh(c_new)

        # out projection + log_softmax over features (dim=2 of (1, B, E)).
        # Padded output columns carry a -1e30 bias -> exp() == 0, lse unaffected.
        logits = (jnp.dot(h_new.astype(bf16), wout_ref[...],
                          preferred_element_type=jnp.float32)
                  + bout_ref[...])                                 # (B, Ep)
        mx = jnp.max(logits, axis=1, keepdims=True)
        lse = jnp.log(jnp.sum(jnp.exp(logits - mx), axis=1, keepdims=True)) + mx
        out_ref[u] = logits - lse                                  # lane-dense store
        return h_new, c_new

    h_fin, c_fin = lax.fori_loop(0, U, step, (hfin_ref[...], cfin_ref[...]),
                                 unroll=True)
    hfin_ref[...] = h_fin
    cfin_ref[...] = c_fin


def init_params(key, H=HIDDEN_SIZE, E=EMBED_DIM, L=MAX_LENGTH):
    """Unpadded parameters (pre-split / pre-transposed, bf16 MXU weights)."""
    ks = jax.random.split(key, 5)

    def lin(k, fan_in, fan_out):
        kw, kb = jax.random.split(k)
        bound = 1.0 / jnp.sqrt(jnp.float32(fan_in))
        W = jax.random.uniform(kw, (fan_out, fan_in), jnp.float32, -bound, bound)
        b = jax.random.uniform(kb, (fan_out,), jnp.float32, -bound, bound)
        return W, b

    W_attn, b_attn = lin(ks[0], H + E, L)        # nn.Linear(H+E, max_length); input = cat(x, c)
    W_comb, b_comb = lin(ks[1], H + E, H)        # nn.Linear(H+E, H); input = cat(x, attn_applied)
    W_ih,   b_ih   = lin(ks[2], H, 4 * H)        # LSTM input->hidden
    W_hh,   b_hh   = lin(ks[3], H, 4 * H)        # LSTM hidden->hidden
    W_out,  b_out  = lin(ks[4], H, E)            # nn.Linear(H, output_size)

    bf = jnp.bfloat16
    return {
        'W_attn_x': W_attn[:, :E].T.astype(bf),   # (E, L)
        'W_attn_c': W_attn[:, E:].T.astype(bf),   # (H, L)
        'b_attn':   b_attn[None, :],              # (1, L)  f32
        'W_comb_x': W_comb[:, :E].T.astype(bf),   # (E, H)
        'W_comb_a': W_comb[:, E:].T.astype(bf),   # (H, H)
        'b_comb':   b_comb[None, :],              # (1, H)  f32
        'W_ih':     W_ih.T.astype(bf),            # (H, 4H)
        'W_hh':     W_hh.T.astype(bf),            # (H, 4H)
        'b_gates':  (b_ih + b_hh)[None, :],       # (1, 4H) f32, pre-summed
        'W_out':    W_out.T.astype(bf),           # (H, E)
        'b_out':    b_out[None, :],               # (1, E)  f32
    }


def _prepare_kernel_params(params, E, H, L, Ep, Hp, Lp):
    """Pad / fuse the unpadded params into 128-lane-dense kernel operands."""
    def pad2(w, rows, cols):
        out = jnp.zeros((rows, cols), w.dtype)
        return out.at[:w.shape[0], :w.shape[1]].set(w)

    # Fused x-projection weight: [ attn x-part | attn_combine x-part ].
    W_xcat = jnp.concatenate(
        [pad2(params['W_attn_x'], Ep, Lp), pad2(params['W_comb_x'], Ep, Hp)],
        axis=1)                                                  # (Ep, Lp+Hp) bf16

    def gate_pad_w(w):       # (H, 4H) -> (Hp, 4*Hp); gate k lives at cols [k*Hp, k*Hp+H)
        out = jnp.zeros((Hp, 4 * Hp), w.dtype)
        for k in range(4):
            out = out.at[:H, k * Hp:k * Hp + H].set(w[:, k * H:(k + 1) * H])
        return out

    def gate_pad_b(b):       # (1, 4H) -> (1, 4*Hp)
        out = jnp.zeros((1, 4 * Hp), b.dtype)
        for k in range(4):
            out = out.at[:, k * Hp:k * Hp + H].set(b[:, k * H:(k + 1) * H])
        return out

    # Padded logit columns get a -1e30 bias so they vanish from log_softmax.
    b_out = jnp.full((1, Ep), -1e30, jnp.float32).at[:, :E].set(params['b_out'])

    return {
        'W_xcat':   W_xcat,                                      # (Ep, Lp+Hp) bf16
        'W_attn_c': pad2(params['W_attn_c'], Hp, Lp),            # (Hp, Lp)    bf16
        'b_attn':   pad2(params['b_attn'], 1, Lp),               # (1, Lp)     f32
        'W_comb_a': pad2(params['W_comb_a'], Hp, Hp),            # (Hp, Hp)    bf16
        'b_comb':   pad2(params['b_comb'], 1, Hp),               # (1, Hp)     f32
        'W_ih':     gate_pad_w(params['W_ih']),                  # (Hp, 4Hp)   bf16
        'W_hh':     gate_pad_w(params['W_hh']),                  # (Hp, 4Hp)   bf16
        'b_gates':  gate_pad_b(params['b_gates']),               # (1, 4Hp)    f32
        'W_out':    pad2(params['W_out'], Hp, Ep),               # (Hp, Ep)    bf16
        'b_out':    b_out,                                       # (1, Ep)     f32
    }


def attn_decoder_decode(params, x_seq, h0, c0, encoder_outputs,
                        *, max_steps_per_block=8):
    """Run T decoder steps fused in a single pallas_call.

    x_seq: (T, B, E) f32; h0/c0: (B, H) f32; encoder_outputs: (L_enc, B, H) f32.
    Returns (log-softmax outputs (T,B,E), attn weights (T,B,MAX_LENGTH),
             h_T (B,H), c_T (B,H)).
    """
    T, B, E = x_seq.shape
    H = h0.shape[1]
    L = params['b_attn'].shape[1]
    L_enc = encoder_outputs.shape[0]

    Ep = _round_up(E, _LANE)
    Hp = _round_up(H, _LANE)
    Lp = _round_up(L, _LANE)
    Lk = _round_up(L_enc, _LANE)                 # padded encoder length (<= Lp)
    U = _pick_steps_per_block(T, max_steps_per_block)

    kp = _prepare_kernel_params(params, E, H, L, Ep, Hp, Lp)

    # Lane-dense, zero-padded activations / state (stripped again below).
    x_pad = jnp.pad(x_seq, ((0, 0), (0, 0), (0, Ep - E)))
    h0_pad = jnp.pad(h0, ((0, 0), (0, Hp - H)))
    c0_pad = jnp.pad(c0, ((0, 0), (0, Hp - H)))
    # Encoder outputs: transpose ONCE to (B, L_enc, H), zero-pad, cast to bf16 so
    # the in-kernel attention contraction is a bf16 MXU dot (f32 accumulate).
    enc = jnp.transpose(encoder_outputs, (1, 0, 2))
    enc = jnp.pad(enc, ((0, 0), (0, Lk - L_enc), (0, Hp - H))).astype(jnp.bfloat16)

    def resident(shape):        # same block every grid step -> VMEM-resident
        nd = len(shape)
        return pl.BlockSpec(shape, lambda i: (0,) * nd)

    def stepped(shape):         # U decode steps per grid iteration
        nd = len(shape)
        return pl.BlockSpec((U,) + shape, lambda i: (i,) + (0,) * nd)

    in_specs = [
        stepped((B, Ep)),                              # x_seq (U steps per block)
        resident((B, Hp)), resident((B, Hp)),          # h0, c0 (read at step 0 only)
        resident((B, Lk, Hp)),                         # encoder outputs (bf16)
        resident(kp['W_xcat'].shape),
        resident(kp['W_attn_c'].shape), resident(kp['b_attn'].shape),
        resident(kp['W_comb_a'].shape), resident(kp['b_comb'].shape),
        resident(kp['W_ih'].shape), resident(kp['W_hh'].shape),
        resident(kp['b_gates'].shape),
        resident(kp['W_out'].shape), resident(kp['b_out'].shape),
    ]
    out_specs = (
        stepped((B, Ep)),                              # per-step log-softmax output
        stepped((B, Lp)),                              # per-step attention weights
        resident((B, Hp)), resident((B, Hp)),          # carried / final h, c
    )
    out_shape = (
        jax.ShapeDtypeStruct((T, B, Ep), jnp.float32),
        jax.ShapeDtypeStruct((T, B, Lp), jnp.float32),
        jax.ShapeDtypeStruct((B, Hp), jnp.float32),
        jax.ShapeDtypeStruct((B, Hp), jnp.float32),
    )

    grid_spec = pltpu.PrefetchScalarGridSpec(
        num_scalar_prefetch=0,
        grid=(T // U,),
        in_specs=in_specs,
        out_specs=out_specs,
    )
    # (h, c) carry across grid iterations -> the step axis MUST stay "arbitrary".
    # VMEM budgeting at the real PyTorch sizes (H=300->384, L=600->640, B=50):
    # resident bf16 enc ~ B*Lk*Hp*2 ~ 23 MiB, weights ~2 MiB.
    #   * v6e / v5e (128 MiB physical): raise vmem_limit_bytes to ~64-96 MiB so
    #     enc + weights stay resident even with default double buffering.
    #   * v7x (64 MiB physical, 32 MiB default scoped): do NOT just raise the
    #     limit — single-buffer the resident enc (pipeline_mode=pl.Buffered(1)),
    #     or pass it with memory_space=pl.ANY and DMA it into VMEM scratch at
    #     grid step 0, or stream it over an extra "arbitrary" L-tile grid axis.
    #     For multiple independent sequences, add a leading "parallel" grid axis
    #     over sequences to use both v7x TensorCores (never split the batch: the
    #     softmax couples the whole batch axis).
    compiler_params = pltpu.CompilerParams(
        dimension_semantics=("arbitrary",),
        vmem_limit_bytes=32 * 1024 * 1024,
    )

    out_p, attw_p, h_p, c_p = pl.pallas_call(
        _attn_decoder_kernel,
        grid_spec=grid_spec,
        out_shape=out_shape,
        compiler_params=compiler_params,
    )(x_pad, h0_pad, c0_pad, enc,
      kp['W_xcat'], kp['W_attn_c'], kp['b_attn'],
      kp['W_comb_a'], kp['b_comb'],
      kp['W_ih'], kp['W_hh'], kp['b_gates'],
      kp['W_out'], kp['b_out'])

    # Strip lane padding; public shapes are the true module shapes.
    return out_p[..., :E], attw_p[..., :L], h_p[:, :H], c_p[:, :H]


def attn_decoder_forward(params, input_tensor, hidden, encoder_outputs):
    """Single decode step with the PyTorch module's exact I/O layout."""
    h0, c0 = hidden                                   # (1, B, H) each
    out_seq, attn_seq, h_new, c_new = attn_decoder_decode(
        params, input_tensor, h0[0], c0[0], encoder_outputs)   # T = 1
    return out_seq, (h_new[None], c_new[None]), attn_seq


# ---------------------------------------------------------------------------
# Pure-JAX reference (same bf16-on-MXU / f32-accumulate policy as the kernel).
# ---------------------------------------------------------------------------
def _bf16_dot(a, w):
    return jnp.dot(a.astype(jnp.bfloat16), w, preferred_element_type=jnp.float32)


def reference_step(params, x, h, c, enc):
    H = h.shape[1]
    attn_logits = (_bf16_dot(x, params['W_attn_x'])
                   + _bf16_dot(c, params['W_attn_c'])
                   + params['b_attn'])
    attn_w = jax.nn.softmax(attn_logits, axis=0)              # batch-axis softmax
    attn_applied = jnp.einsum(
        'bl,lbh->bh', attn_w[:, :enc.shape[0]].astype(jnp.bfloat16),
        enc.astype(jnp.bfloat16), preferred_element_type=jnp.float32)
    lstm_in = jax.nn.relu(_bf16_dot(x, params['W_comb_x'])
                          + _bf16_dot(attn_applied, params['W_comb_a'])
                          + params['b_comb'])
    gates = (_bf16_dot(lstm_in, params['W_ih'])
             + _bf16_dot(h, params['W_hh'])
             + params['b_gates'])
    i_g = jax.nn.sigmoid(gates[:, 0 * H:1 * H])
    f_g = jax.nn.sigmoid(gates[:, 1 * H:2 * H])
    g_g = jnp.tanh(gates[:, 2 * H:3 * H])
    o_g = jax.nn.sigmoid(gates[:, 3 * H:4 * H])
    c_new = f_g * c + i_g * g_g
    h_new = o_g * jnp.tanh(c_new)
    out = jax.nn.log_softmax(_bf16_dot(h_new, params['W_out']) + params['b_out'], axis=1)
    return out, h_new, c_new, attn_w


if __name__ == "__main__":
    key = jax.random.PRNGKey(0)
    k_par, k_x, k_h, k_c, k_enc, k_seq = jax.random.split(key, 6)

    params = init_params(k_par)
    input_tensor = jax.random.normal(k_x, (1, BATCH_SIZE, EMBED_DIM), jnp.float32)
    h0 = jax.random.normal(k_h, (1, BATCH_SIZE, HIDDEN_SIZE), jnp.float32)
    c0 = jax.random.normal(k_c, (1, BATCH_SIZE, HIDDEN_SIZE), jnp.float32)
    encoder_outputs = jax.random.normal(
        k_enc, (ENC_LEN, BATCH_SIZE, HIDDEN_SIZE), jnp.float32)

    # bf16 MXU ops + EUP approximate reciprocal in the softmax denominator.
    atol = rtol = 2e-3

    # ---- single step: exact PyTorch forward layout -------------------------
    out, (h_new, c_new), attn_w = attn_decoder_forward(
        params, input_tensor, (h0, c0), encoder_outputs)
    jax.block_until_ready((out, h_new, c_new, attn_w))

    r_out, r_h, r_c, r_attn = reference_step(
        params, input_tensor[0], h0[0], c0[0], encoder_outputs)

    assert out.shape == (1, BATCH_SIZE, EMBED_DIM)
    assert h_new.shape == (1, BATCH_SIZE, HIDDEN_SIZE)
    assert c_new.shape == (1, BATCH_SIZE, HIDDEN_SIZE)
    assert attn_w.shape == (1, BATCH_SIZE, MAX_LENGTH)
    assert jnp.allclose(out[0], r_out, atol=atol, rtol=rtol)
    assert jnp.allclose(h_new[0], r_h, atol=atol, rtol=rtol)
    assert jnp.allclose(c_new[0], r_c, atol=atol, rtol=rtol)
    assert jnp.allclose(attn_w[0], r_attn, atol=atol, rtol=rtol)

    # ---- fused T-step decode: U steps per grid iteration, carried (h, c) ---
    T = 8
    x_seq = jax.random.normal(k_seq, (T, BATCH_SIZE, EMBED_DIM), jnp.float32)
    out_seq, attn_seq, h_T, c_T = attn_decoder_decode(
        params, x_seq, h0[0], c0[0], encoder_outputs, max_steps_per_block=4)
    jax.block_until_ready((out_seq, attn_seq, h_T, c_T))

    assert out_seq.shape == (T, BATCH_SIZE, EMBED_DIM)
    assert attn_seq.shape == (T, BATCH_SIZE, MAX_LENGTH)

    rh, rc = h0[0], c0[0]
    for t in range(T):
        r_o, rh, rc, r_a = reference_step(params, x_seq[t], rh, rc, encoder_outputs)
        assert jnp.allclose(out_seq[t], r_o, atol=atol, rtol=rtol)
        assert jnp.allclose(attn_seq[t], r_a, atol=atol, rtol=rtol)
    assert jnp.allclose(h_T, rh, atol=atol, rtol=rtol)
    assert jnp.allclose(c_T, rc, atol=atol, rtol=rtol)

    print("KERNEL_OK")
</pallas_src>

<mosaic_0001>
module attributes {stable_mosaic.version = 11 : i64} {
  func.func @_attn_decoder_kernel(%arg0: i32, %arg1: memref<1x8x128xf32, #tpu.memory_space<vmem>>, %arg2: memref<8x128xf32, #tpu.memory_space<vmem>>, %arg3: memref<8x128xf32, #tpu.memory_space<vmem>>, %arg4: memref<8x128x128xbf16, #tpu.memory_space<vmem>>, %arg5: memref<128x256xbf16, #tpu.memory_space<vmem>>, %arg6: memref<128x128xbf16, #tpu.memory_space<vmem>>, %arg7: memref<1x128xf32, #tpu.memory_space<vmem>>, %arg8: memref<128x128xbf16, #tpu.memory_space<vmem>>, %arg9: memref<1x128xf32, #tpu.memory_space<vmem>>, %arg10: memref<128x512xbf16, #tpu.memory_space<vmem>>, %arg11: memref<128x512xbf16, #tpu.memory_space<vmem>>, %arg12: memref<1x512xf32, #tpu.memory_space<vmem>>, %arg13: memref<128x128xbf16, #tpu.memory_space<vmem>>, %arg14: memref<1x128xf32, #tpu.memory_space<vmem>>, %arg15: memref<1x8x128xf32, #tpu.memory_space<vmem>>, %arg16: memref<1x8x128xf32, #tpu.memory_space<vmem>>, %arg17: memref<8x128xf32, #tpu.memory_space<vmem>>, %arg18: memref<8x128xf32, #tpu.memory_space<vmem>>) attributes {dimension_semantics = [#tpu.dimension_semantics<arbitrary>], iteration_bounds = array<i64: 1>, scalar_prefetch = 0 : i64, scratch_operands = 0 : i64, tpu.core_type = #tpu.core_type<tc>, window_params = [{transform_indices = @transform_0, window_bounds = array<i64: 1, 8, 128>}, {pipeline_mode = #tpu.pipeline_mode<synchronous>, transform_indices = @transform_1, window_bounds = array<i64: 8, 128>}, {pipeline_mode = #tpu.pipeline_mode<synchronous>, transform_indices = @transform_2, window_bounds = array<i64: 8, 128>}, {pipeline_mode = #tpu.pipeline_mode<synchronous>, transform_indices = @transform_3, window_bounds = array<i64: 8, 128, 128>}, {pipeline_mode = #tpu.pipeline_mode<synchronous>, transform_indices = @transform_4, window_bounds = array<i64: 128, 256>}, {pipeline_mode = #tpu.pipeline_mode<synchronous>, transform_indices = @transform_5, window_bounds = array<i64: 128, 128>}, {pipeline_mode = #tpu.pipeline_mode<synchronous>, transform_indices = @transform_6, window_bounds = array<i64: 1, 128>}, {pipeline_mode = #tpu.pipeline_mode<synchronous>, transform_indices = @transform_7, window_bounds = array<i64: 128, 128>}, {pipeline_mode = #tpu.pipeline_mode<synchronous>, transform_indices = @transform_8, window_bounds = array<i64: 1, 128>}, {pipeline_mode = #tpu.pipeline_mode<synchronous>, transform_indices = @transform_9, window_bounds = array<i64: 128, 512>}, {pipeline_mode = #tpu.pipeline_mode<synchronous>, transform_indices = @transform_10, window_bounds = array<i64: 128, 512>}, {pipeline_mode = #tpu.pipeline_mode<synchronous>, transform_indices = @transform_11, window_bounds = array<i64: 1, 512>}, {pipeline_mode = #tpu.pipeline_mode<synchronous>, transform_indices = @transform_12, window_bounds = array<i64: 128, 128>}, {pipeline_mode = #tpu.pipeline_mode<synchronous>, transform_indices = @transform_13, window_bounds = array<i64: 1, 128>}, {transform_indices = @transform_14, window_bounds = array<i64: 1, 8, 128>}, {transform_indices = @transform_15, window_bounds = array<i64: 1, 8, 128>}, {pipeline_mode = #tpu.pipeline_mode<synchronous>, transform_indices = @transform_16, window_bounds = array<i64: 8, 128>}, {pipeline_mode = #tpu.pipeline_mode<synchronous>, transform_indices = @transform_17, window_bounds = array<i64: 8, 128>}]} {
    %c0_i32 = arith.constant 0 : i32
    %0 = arith.cmpi eq, %arg0, %c0_i32 : i32
    %1 = arith.extui %0 : i1 to i32
    %c0_i32_0 = arith.constant 0 : i32
    %2 = arith.cmpi ne, %1, %c0_i32_0 : i32
    scf.if %2 {
      %c0_52 = arith.constant 0 : index
      %c0_53 = arith.constant 0 : index
      %106 = vector.load %arg2[%c0_52, %c0_53] : memref<8x128xf32, #tpu.memory_space<vmem>>, vector<8x128xf32>
      %c0_54 = arith.constant 0 : index
      %c0_55 = arith.constant 0 : index
      %107 = vector.load %arg17[%c0_54, %c0_55] : memref<8x128xf32, #tpu.memory_space<vmem>>, vector<8x128xf32>
      tpu.vector_store %arg17[%c0_54, %c0_55], %106 {strides = array<i32>} : memref<8x128xf32, #tpu.memory_space<vmem>>, vector<8x128xf32>,
      %c0_56 = arith.constant 0 : index
      %c0_57 = arith.constant 0 : index
      %108 = vector.load %arg3[%c0_56, %c0_57] : memref<8x128xf32, #tpu.memory_space<vmem>>, vector<8x128xf32>
      %c0_58 = arith.constant 0 : index
      %c0_59 = arith.constant 0 : index
      %109 = vector.load %arg18[%c0_58, %c0_59] : memref<8x128xf32, #tpu.memory_space<vmem>>, vector<8x128xf32>
      tpu.vector_store %arg18[%c0_58, %c0_59], %108 {strides = array<i32>} : memref<8x128xf32, #tpu.memory_space<vmem>>, vector<8x128xf32>,
    } else {
    }
    %c0 = arith.constant 0 : index
    %c0_1 = arith.constant 0 : index
    %3 = vector.load %arg17[%c0, %c0_1] : memref<8x128xf32, #tpu.memory_space<vmem>>, vector<8x128xf32>
    %c0_2 = arith.constant 0 : index
    %c0_3 = arith.constant 0 : index
    %4 = vector.load %arg18[%c0_2, %c0_3] : memref<8x128xf32, #tpu.memory_space<vmem>>, vector<8x128xf32>
    %c0_i32_4 = arith.constant 0 : i32
    %5 = arith.index_cast %c0_i32_4 : i32 to index
    %c0_5 = arith.constant 0 : index
    %c0_6 = arith.constant 0 : index
    %6 = vector.load %arg1[%5, %c0_5, %c0_6] : memref<1x8x128xf32, #tpu.memory_space<vmem>>, vector<1x8x128xf32>
    %7 = vector.shape_cast %6 : vector<1x8x128xf32> to vector<8x128xf32>
    %8 = arith.truncf %7 : vector<8x128xf32> to vector<8x128xbf16>
    %c0_7 = arith.constant 0 : index
    %c0_8 = arith.constant 0 : index
    %9 = vector.load %arg5[%c0_7, %c0_8] : memref<128x256xbf16, #tpu.memory_space<vmem>>, vector<128x256xbf16>
    %cst = arith.constant dense<0.000000e+00> : vector<8x256xf32>
    %10 = tpu.matmul %8, %9, %cst {dimension_numbers = #tpu.dot_dimension_numbers<[1], [0], [0], [1], [0, 0, 1, 1], [], []>} : vector<8x128xbf16>, vector<128x256xbf16>, vector<8x256xf32> -> vector<8x256xf32>
    %11 = vector.extract_strided_slice %10 {offsets = [0, 0], sizes = [8, 128], strides = [1, 1]} : vector<8x256xf32> to vector<8x128xf32>
    %12 = arith.truncf %4 : vector<8x128xf32> to vector<8x128xbf16>
    %c0_9 = arith.constant 0 : index
    %c0_10 = arith.constant 0 : index
    %13 = vector.load %arg6[%c0_9, %c0_10] : memref<128x128xbf16, #tpu.memory_space<vmem>>, vector<128x128xbf16>
    %cst_11 = arith.constant dense<0.000000e+00> : vector<8x128xf32>
    %14 = tpu.matmul %12, %13, %cst_11 {dimension_numbers = #tpu.dot_dimension_numbers<[1], [0], [0], [1], [0, 0, 1, 1], [], []>} : vector<8x128xbf16>, vector<128x128xbf16>, vector<8x128xf32> -> vector<8x128xf32>
    %15 = arith.addf %11, %14 : vector<8x128xf32>
    %c0_12 = arith.constant 0 : index
    %c0_13 = arith.constant 0 : index
    %16 = vector.load %arg7[%c0_12, %c0_13] : memref<1x128xf32, #tpu.memory_space<vmem>>, vector<1x128xf32>
    %17 = vector.broadcast %16 : vector<1x128xf32> to vector<8x128xf32>
    %18 = arith.addf %15, %17 : vector<8x128xf32>
    %cst_14 = arith.constant dense<0xFF800000> : vector<128xf32>
    %19 = vector.multi_reduction <maximumf>, %18, %cst_14 [0] : vector<8x128xf32> to vector<128xf32>
    %20 = vector.shape_cast %19 : vector<128xf32> to vector<1x128xf32>
    %21 = vector.broadcast %20 : vector<1x128xf32> to vector<8x128xf32>
    %22 = arith.subf %18, %21 : vector<8x128xf32>
    %23 = math.exp %22 : vector<8x128xf32>
    %cst_15 = arith.constant dense<0.000000e+00> : vector<128xf32>
    %24 = vector.multi_reduction <add>, %23, %cst_15 [0] : vector<8x128xf32> to vector<128xf32>
    %25 = vector.shape_cast %24 : vector<128xf32> to vector<1x128xf32>
    %26 = tpu.reciprocal %25 {approx = true} : vector<1x128xf32> -> vector<1x128xf32>
    %27 = vector.broadcast %26 : vector<1x128xf32> to vector<8x128xf32>
    %28 = arith.mulf %23, %27 : vector<8x128xf32>
    %29 = arith.index_cast %c0_i32_4 : i32 to index
    %c0_16 = arith.constant 0 : index
    %c0_17 = arith.constant 0 : index
    %30 = vector.load %arg16[%29, %c0_16, %c0_17] : memref<1x8x128xf32, #tpu.memory_space<vmem>>, vector<1x8x128xf32>
    %31 = vector.shape_cast %30 : vector<1x8x128xf32> to vector<8x128xf32>
    %32 = vector.shape_cast %28 : vector<8x128xf32> to vector<1x8x128xf32>
    tpu.vector_store %arg16[%29, %c0_16, %c0_17], %32 {strides = array<i32>} : memref<1x8x128xf32, #tpu.memory_space<vmem>>, vector<1x8x128xf32>,
    %33 = arith.truncf %28 : vector<8x128xf32> to vector<8x128xbf16>
    %34 = vector.shape_cast %33 : vector<8x128xbf16> to vector<8x1x128xbf16>
    %c0_18 = arith.constant 0 : index
    %c0_19 = arith.constant 0 : index
    %c0_20 = arith.constant 0 : index
    %35 = vector.load %arg4[%c0_18, %c0_19, %c0_20] : memref<8x128x128xbf16, #tpu.memory_space<vmem>>, vector<8x128x128xbf16>
    %cst_21 = arith.constant dense<0.000000e+00> : vector<8x1x128xf32>
    %36 = tpu.matmul %34, %35, %cst_21 {dimension_numbers = #tpu.dot_dimension_numbers<[2], [1], [1], [2], [0, 0, 0, 1, 1, 2], [0], [0]>} : vector<8x1x128xbf16>, vector<8x128x128xbf16>, vector<8x1x128xf32> -> vector<8x1x128xf32>
    %37 = vector.shape_cast %36 : vector<8x1x128xf32> to vector<8x128xf32>
    %38 = vector.extract_strided_slice %10 {offsets = [0, 128], sizes = [8, 128], strides = [1, 1]} : vector<8x256xf32> to vector<8x128xf32>
    %39 = arith.truncf %37 : vector<8x128xf32> to vector<8x128xbf16>
    %c0_22 = arith.constant 0 : index
    %c0_23 = arith.constant 0 : index
    %40 = vector.load %arg8[%c0_22, %c0_23] : memref<128x128xbf16, #tpu.memory_space<vmem>>, vector<128x128xbf16>
    %cst_24 = arith.constant dense<0.000000e+00> : vector<8x128xf32>
    %41 = tpu.matmul %39, %40, %cst_24 {dimension_numbers = #tpu.dot_dimension_numbers<[1], [0], [0], [1], [0, 0, 1, 1], [], []>} : vector<8x128xbf16>, vector<128x128xbf16>, vector<8x128xf32> -> vector<8x128xf32>
    %42 = arith.addf %38, %41 : vector<8x128xf32>
    %c0_25 = arith.constant 0 : index
    %c0_26 = arith.constant 0 : index
    %43 = vector.load %arg9[%c0_25, %c0_26] : memref<1x128xf32, #tpu.memory_space<vmem>>, vector<1x128xf32>
    %44 = vector.broadcast %43 : vector<1x128xf32> to vector<8x128xf32>
    %45 = arith.addf %42, %44 : vector<8x128xf32>
    %cst_27 = arith.constant 0.000000e+00 : f32
    %46 = vector.broadcast %cst_27 : f32 to vector<8x128xf32>
    %47 = arith.maximumf %45, %46 : vector<8x128xf32>
    %48 = arith.truncf %47 : vector<8x128xf32> to vector<8x128xbf16>
    %c0_28 = arith.constant 0 : index
    %c0_29 = arith.constant 0 : index
    %49 = vector.load %arg10[%c0_28, %c0_29] : memref<128x512xbf16, #tpu.memory_space<vmem>>, vector<128x512xbf16>
    %cst_30 = arith.constant dense<0.000000e+00> : vector<8x512xf32>
    %50 = tpu.matmul %48, %49, %cst_30 {dimension_numbers = #tpu.dot_dimension_numbers<[1], [0], [0], [1], [0, 0, 1, 1], [], []>} : vector<8x128xbf16>, vector<128x512xbf16>, vector<8x512xf32> -> vector<8x512xf32>
    %51 = arith.truncf %3 : vector<8x128xf32> to vector<8x128xbf16>
    %c0_31 = arith.constant 0 : index
    %c0_32 = arith.constant 0 : index
    %52 = vector.load %arg11[%c0_31, %c0_32] : memref<128x512xbf16, #tpu.memory_space<vmem>>, vector<128x512xbf16>
    %cst_33 = arith.constant dense<0.000000e+00> : vector<8x512xf32>
    %53 = tpu.matmul %51, %52, %cst_33 {dimension_numbers = #tpu.dot_dimension_numbers<[1], [0], [0], [1], [0, 0, 1, 1], [], []>} : vector<8x128xbf16>, vector<128x512xbf16>, vector<8x512xf32> -> vector<8x512xf32>
    %54 = arith.addf %50, %53 : vector<8x512xf32>
    %c0_34 = arith.constant 0 : index
    %c0_35 = arith.constant 0 : index
    %55 = vector.load %arg12[%c0_34, %c0_35] : memref<1x512xf32, #tpu.memory_space<vmem>>, vector<1x512xf32>
    %56 = vector.broadcast %55 : vector<1x512xf32> to vector<8x512xf32>
    %57 = arith.addf %54, %56 : vector<8x512xf32>
    %58 = vector.extract_strided_slice %57 {offsets = [0, 0], sizes = [8, 128], strides = [1, 1]} : vector<8x512xf32> to vector<8x128xf32>
    %59 = arith.negf %58 : vector<8x128xf32>
    %60 = math.exp %59 : vector<8x128xf32>
    %cst_36 = arith.constant 1.000000e+00 : f32
    %61 = vector.broadcast %cst_36 : f32 to vector<8x128xf32>
    %62 = arith.addf %61, %60 : vector<8x128xf32>
    %63 = arith.divf %61, %62 : vector<8x128xf32>
    %64 = vector.extract_strided_slice %57 {offsets = [0, 128], sizes = [8, 128], strides = [1, 1]} : vector<8x512xf32> to vector<8x128xf32>
    %65 = arith.negf %64 : vector<8x128xf32>
    %66 = math.exp %65 : vector<8x128xf32>
    %cst_37 = arith.constant 1.000000e+00 : f32
    %67 = vector.broadcast %cst_37 : f32 to vector<8x128xf32>
    %68 = arith.addf %67, %66 : vector<8x128xf32>
    %69 = arith.divf %67, %68 : vector<8x128xf32>
    %70 = vector.extract_strided_slice %57 {offsets = [0, 256], sizes = [8, 128], strides = [1, 1]} : vector<8x512xf32> to vector<8x128xf32>
    %71 = math.tanh %70 : vector<8x128xf32>
    %72 = vector.extract_strided_slice %57 {offsets = [0, 384], sizes = [8, 128], strides = [1, 1]} : vector<8x512xf32> to vector<8x128xf32>
    %73 = arith.negf %72 : vector<8x128xf32>
    %74 = math.exp %73 : vector<8x128xf32>
    %cst_38 = arith.constant 1.000000e+00 : f32
    %75 = vector.broadcast %cst_38 : f32 to vector<8x128xf32>
    %76 = arith.addf %75, %74 : vector<8x128xf32>
    %77 = arith.divf %75, %76 : vector<8x128xf32>
    %78 = arith.mulf %69, %4 : vector<8x128xf32>
    %79 = arith.mulf %63, %71 : vector<8x128xf32>
    %80 = arith.addf %78, %79 : vector<8x128xf32>
    %81 = math.tanh %80 : vector<8x128xf32>
    %82 = arith.mulf %77, %81 : vector<8x128xf32>
    %83 = arith.truncf %82 : vector<8x128xf32> to vector<8x128xbf16>
    %c0_39 = arith.constant 0 : index
    %c0_40 = arith.constant 0 : index
    %84 = vector.load %arg13[%c0_39, %c0_40] : memref<128x128xbf16, #tpu.memory_space<vmem>>, vector<128x128xbf16>
    %cst_41 = arith.constant dense<0.000000e+00> : vector<8x128xf32>
    %85 = tpu.matmul %83, %84, %cst_41 {dimension_numbers = #tpu.dot_dimension_numbers<[1], [0], [0], [1], [0, 0, 1, 1], [], []>} : vector<8x128xbf16>, vector<128x128xbf16>, vector<8x128xf32> -> vector<8x128xf32>
    %c0_42 = arith.constant 0 : index
    %c0_43 = arith.constant 0 : index
    %86 = vector.load %arg14[%c0_42, %c0_43] : memref<1x128xf32, #tpu.memory_space<vmem>>, vector<1x128xf32>
    %87 = vector.broadcast %86 : vector<1x128xf32> to vector<8x128xf32>
    %88 = arith.addf %85, %87 : vector<8x128xf32>
    %cst_44 = arith.constant dense<0xFF800000> : vector<8xf32>
    %89 = vector.multi_reduction <maximumf>, %88, %cst_44 [1] : vector<8x128xf32> to vector<8xf32>
    %90 = vector.shape_cast %89 : vector<8xf32> to vector<8x1xf32>
    %91 = vector.broadcast %90 : vector<8x1xf32> to vector<8x128xf32>
    %92 = arith.subf %88, %91 : vector<8x128xf32>
    %93 = math.exp %92 : vector<8x128xf32>
    %cst_45 = arith.constant dense<0.000000e+00> : vector<8xf32>
    %94 = vector.multi_reduction <add>, %93, %cst_45 [1] : vector<8x128xf32> to vector<8xf32>
    %95 = vector.shape_cast %94 : vector<8xf32> to vector<8x1xf32>
    %96 = math.log %95 : vector<8x1xf32>
    %97 = arith.addf %96, %90 : vector<8x1xf32>
    %98 = vector.broadcast %97 : vector<8x1xf32> to vector<8x128xf32>
    %99 = arith.subf %88, %98 : vector<8x128xf32>
    %100 = arith.index_cast %c0_i32_4 : i32 to index
    %c0_46 = arith.constant 0 : index
    %c0_47 = arith.constant 0 : index
    %101 = vector.load %arg15[%100, %c0_46, %c0_47] : memref<1x8x128xf32, #tpu.memory_space<vmem>>, vector<1x8x128xf32>
    %102 = vector.shape_cast %101 : vector<1x8x128xf32> to vector<8x128xf32>
    %103 = vector.shape_cast %99 : vector<8x128xf32> to vector<1x8x128xf32>
    tpu.vector_store %arg15[%100, %c0_46, %c0_47], %103 {strides = array<i32>} : memref<1x8x128xf32, #tpu.memory_space<vmem>>, vector<1x8x128xf32>,
    %c1_i32 = arith.constant 1 : i32
    %c0_48 = arith.constant 0 : index
    %c0_49 = arith.constant 0 : index
    %104 = vector.load %arg17[%c0_48, %c0_49] : memref<8x128xf32, #tpu.memory_space<vmem>>, vector<8x128xf32>
    tpu.vector_store %arg17[%c0_48, %c0_49], %82 {strides = array<i32>} : memref<8x128xf32, #tpu.memory_space<vmem>>, vector<8x128xf32>,
    %c0_50 = arith.constant 0 : index
    %c0_51 = arith.constant 0 : index
    %105 = vector.load %arg18[%c0_50, %c0_51] : memref<8x128xf32, #tpu.memory_space<vmem>>, vector<8x128xf32>
    tpu.vector_store %arg18[%c0_50, %c0_51], %80 {strides = array<i32>} : memref<8x128xf32, #tpu.memory_space<vmem>>, vector<8x128xf32>,
    return
  }
  func.func @transform_0(%arg0: i32) -> (i32, i32, i32) {
    %c0_i32 = arith.constant 0 : i32
    %c0_i32_0 = arith.constant 0 : i32
    %c0_i32_1 = arith.constant 0 : i32
    return %arg0, %c0_i32, %c0_i32_0 : i32, i32, i32
  }
  func.func @transform_1(%arg0: i32) -> (i32, i32) {
    %c0_i32 = arith.constant 0 : i32
    %c0_i32_0 = arith.constant 0 : i32
    %c0_i32_1 = arith.constant 0 : i32
    return %c0_i32, %c0_i32_0 : i32, i32
  }
  func.func @transform_2(%arg0: i32) -> (i32, i32) {
    %c0_i32 = arith.constant 0 : i32
    %c0_i32_0 = arith.constant 0 : i32
    %c0_i32_1 = arith.constant 0 : i32
    return %c0_i32, %c0_i32_0 : i32, i32
  }
  func.func @transform_3(%arg0: i32) -> (i32, i32, i32) {
    %c0_i32 = arith.constant 0 : i32
    %c0_i32_0 = arith.constant 0 : i32
    %c0_i32_1 = arith.constant 0 : i32
    %c0_i32_2 = arith.constant 0 : i32
    return %c0_i32, %c0_i32_0, %c0_i32_1 : i32, i32, i32
  }
  func.func @transform_4(%arg0: i32) -> (i32, i32) {
    %c0_i32 = arith.constant 0 : i32
    %c0_i32_0 = arith.constant 0 : i32
    %c0_i32_1 = arith.constant 0 : i32
    return %c0_i32, %c0_i32_0 : i32, i32
  }
  func.func @transform_5(%arg0: i32) -> (i32, i32) {
    %c0_i32 = arith.constant 0 : i32
    %c0_i32_0 = arith.constant 0 : i32
    %c0_i32_1 = arith.constant 0 : i32
    return %c0_i32, %c0_i32_0 : i32, i32
  }
  func.func @transform_6(%arg0: i32) -> (i32, i32) {
    %c0_i32 = arith.constant 0 : i32
    %c0_i32_0 = arith.constant 0 : i32
    %c0_i32_1 = arith.constant 0 : i32
    return %c0_i32, %c0_i32_0 : i32, i32
  }
  func.func @transform_7(%arg0: i32) -> (i32, i32) {
    %c0_i32 = arith.constant 0 : i32
    %c0_i32_0 = arith.constant 0 : i32
    %c0_i32_1 = arith.constant 0 : i32
    return %c0_i32, %c0_i32_0 : i32, i32
  }
  func.func @transform_8(%arg0: i32) -> (i32, i32) {
    %c0_i32 = arith.constant 0 : i32
    %c0_i32_0 = arith.constant 0 : i32
    %c0_i32_1 = arith.constant 0 : i32
    return %c0_i32, %c0_i32_0 : i32, i32
  }
  func.func @transform_9(%arg0: i32) -> (i32, i32) {
    %c0_i32 = arith.constant 0 : i32
    %c0_i32_0 = arith.constant 0 : i32
    %c0_i32_1 = arith.constant 0 : i32
    return %c0_i32, %c0_i32_0 : i32, i32
  }
  func.func @transform_10(%arg0: i32) -> (i32, i32) {
    %c0_i32 = arith.constant 0 : i32
    %c0_i32_0 = arith.constant 0 : i32
    %c0_i32_1 = arith.constant 0 : i32
    return %c0_i32, %c0_i32_0 : i32, i32
  }
  func.func @transform_11(%arg0: i32) -> (i32, i32) {
    %c0_i32 = arith.constant 0 : i32
    %c0_i32_0 = arith.constant 0 : i32
    %c0_i32_1 = arith.constant 0 : i32
    return %c0_i32, %c0_i32_0 : i32, i32
  }
  func.func @transform_12(%arg0: i32) -> (i32, i32) {
    %c0_i32 = arith.constant 0 : i32
    %c0_i32_0 = arith.constant 0 : i32
    %c0_i32_1 = arith.constant 0 : i32
    return %c0_i32, %c0_i32_0 : i32, i32
  }
  func.func @transform_13(%arg0: i32) -> (i32, i32) {
    %c0_i32 = arith.constant 0 : i32
    %c0_i32_0 = arith.constant 0 : i32
    %c0_i32_1 = arith.constant 0 : i32
    return %c0_i32, %c0_i32_0 : i32, i32
  }
  func.func @transform_14(%arg0: i32) -> (i32, i32, i32) {
    %c0_i32 = arith.constant 0 : i32
    %c0_i32_0 = arith.constant 0 : i32
    %c0_i32_1 = arith.constant 0 : i32
    return %arg0, %c0_i32, %c0_i32_0 : i32, i32, i32
  }
  func.func @transform_15(%arg0: i32) -> (i32, i32, i32) {
    %c0_i32 = arith.constant 0 : i32
    %c0_i32_0 = arith.constant 0 : i32
    %c0_i32_1 = arith.constant 0 : i32
    return %arg0, %c0_i32, %c0_i32_0 : i32, i32, i32
  }
  func.func @transform_16(%arg0: i32) -> (i32, i32) {
    %c0_i32 = arith.constant 0 : i32
    %c0_i32_0 = arith.constant 0 : i32
    %c0_i32_1 = arith.constant 0 : i32
    return %c0_i32, %c0_i32_0 : i32, i32
  }
  func.func @transform_17(%arg0: i32) -> (i32, i32) {
    %c0_i32 = arith.constant 0 : i32
    %c0_i32_0 = arith.constant 0 : i32
    %c0_i32_1 = arith.constant 0 : i32
    return %c0_i32, %c0_i32_0 : i32, i32
  }
}

</mosaic_0001>

<bundles_post_ra>
// kernel: tpu_custom_call.1
= control target key start
LH: loop header
LB: loop body
LE: loop exit
PB: predicated region body
PF: predicated region fallthrough
CT: control target
= control target key end

     0   :  { %s3720_s0 = inlined_call_operand.hbm [shape: f32[1,8,128], index: 0, kind: input, shape index: {}]   ;;  %s3721_s1 = inlined_call_operand.hbm [shape: f32[8,128], index: 1, kind: input, shape index: {}]   ;;  %s3722_s2 = inlined_call_operand.hbm [shape: f32[8,128], index: 2, kind: input, shape index: {}]   ;;  %s3723_s3 = inlined_call_operand.hbm [shape: bf16[8,128,128], index: 3, kind: input, shape index: {}]   ;;  %s3724_s4 = inlined_call_operand.hbm [shape: bf16[128,256], index: 4, kind: input, shape index: {}]   ;;  %s3725_s5 = inlined_call_operand.hbm [shape: bf16[128,128], index: 5, kind: input, shape index: {}]   ;;  %s3726_s6 = inlined_call_operand.vmem [shape: f32[1,128], index: 6, kind: input, shape index: {}]   ;;  %s3727_s7 = inlined_call_operand.hbm [shape: bf16[128,128], index: 7, kind: input, shape index: {}]   ;;  %s3728_s8 = inlined_call_operand.vmem [shape: f32[1,128], index: 8, kind: input, shape index: {}]   ;;  %s3729_s9 = inlined_call_operand.hbm [shape: bf16[128,512], index: 9, kind: input, shape index: {}]   ;;  %s3730_s10 = inlined_call_operand.hbm [shape: bf16[128,512], index: 10, kind: input, shape index: {}]   ;;  %s3731_s11 = inlined_call_operand.vmem [shape: f32[1,512], index: 11, kind: input, shape index: {}]   ;;  %s3732_s12 = inlined_call_operand.hbm [shape: bf16[128,128], index: 12, kind: input, shape index: {}]   ;;  %s3733_s13 = inlined_call_operand.vmem [shape: f32[1,128], index: 13, kind: input, shape index: {}]   ;;  %s3734_s14 = inlined_call_operand.hbm [shape: f32[1,8,128], index: 14, kind: output, shape index: {0}]   ;;  %s3735_s15 = inlined_call_operand.hbm [shape: f32[1,8,128], index: 15, kind: output, shape index: {1}]   ;;  %s3736_s16 = inlined_call_operand.hbm [shape: f32[8,128], index: 16, kind: output, shape index: {2}]   ;;  %s3737_s17 = inlined_call_operand.hbm [shape: f32[8,128], index: 17, kind: output, shape index: {3}]  }
   0x1   :  { %3738 = sst [smem:[#allocation34_spill]] %s3720_s0 }
   0x2   :  { %3739 = sst [smem:[#allocation35_spill]] %s3721_s1 }
   0x3   :  { %23 = vsyncpa [#allocation3], 0 }
   0x4   :  { %24 = vsyncpa [#allocation6], 0 }
   0x5   :  { %25 = vsyncpa [#allocation9], 0 }
   0x6   :  { %26 = vsyncpa [#allocation12], 0 }
   0x7   :  { %27 = vsyncpa [#allocation15], 0 }
   0x8   :  { %28 = vsyncpa [#allocation18], 0 }
   0x9   :  { %29 = vsyncpa [#allocation4], 0 }
   0xa   :  { %30 = vsyncpa [#allocation21], 0 }
   0xb   :  { %31 = vsyncpa [#allocation24], 0  ;;  %s3380_s24 = smov [#allocation5]   ;;  %s3381_s26 = smov [#allocation8]  }
   0xc   :  { %s48_s25 = sshll.u32 %s3380_s24, 4  ;;  %s67_s27 = sshll.u32 %s3381_s26, 4  ;;  %s49_s25 = int_to_ptr.vmem [resolvable:$true] %s48_s25  ;;  %s68_s27 = int_to_ptr.vmem [resolvable:$true] %s67_s27 }
   0xd   :  { %s3090_s28 = scalar_lea.vmem %s49_s25, 128  ;;  %p3095_p1 = scmp.lt.s32.totalorder %s49_s25, %s49_s25 }
   0xe   :  { %p3091_p0 = scmp.ne.s32.totalorder %s49_s25, %s3090_s28  ;;  %p3096_p2 = scmp.lt.s32.totalorder %s3090_s28, %s3090_s28 }
  0x10   :  { %p3097_p3 = por %p3096_p2, %p3095_p1 }
  0x12   :  { %p3098_p4 = pnand %p3097_p3, %p3091_p0 }
  0x14   :  { %3101 = shalt.err (!%p3098_p4)
}
  0x15   :  { %s3740_s30 = sld [smem:[#allocation35_spill]]  ;;  %s3110_s18 = scalar_lea.vmem %s68_s27, 8192 }
  0x16   :  { %p3111_p5 = scmp.ne.s32.totalorder %s68_s27, %s3110_s18  ;;  %p3115_p6 = scmp.lt.s32.totalorder %s68_s27, %s68_s27 }
  0x17   :  { %p3116_p7 = scmp.lt.s32.totalorder %s3110_s18, %s3110_s18 }
  0x19   :  { %p3117_p8 = por %p3116_p7, %p3115_p6 }
  0x1b   :  { %51 = dma.hbm_to_vmem [thread:$0]  %s3740_s30, 128, %s49_s25, [#allocation6]  }
  0x1c   :  { %p3118_p9 = pnand %p3117_p8, %p3111_p5 }
  0x1e   :  { %3121 = shalt.err (!%p3118_p9)
}
  0x1f   :  { %s3382_s19 = smov 64   ;;  %s3383_s1 = smov 4  }
  0x20   :  { %73 = dma.hbm_to_vmem [thread:$0]  %s3723_s3, 8192, %s68_s27, [#allocation9], %s3382_s19, %s3382_s19, %s3383_s1  }
  0x21   :  { %s3384_s22 = smov [#allocation11]   ;;  %s3385_s24 = smov [#allocation14]  }
  0x22   :  { %s91_s23 = sshll.u32 %s3384_s22, 4  ;;  %s119_s25 = sshll.u32 %s3385_s24, 4  ;;  %s92_s23 = int_to_ptr.vmem [resolvable:$true] %s91_s23  ;;  %s120_s25 = int_to_ptr.vmem [resolvable:$true] %s119_s25 }
  0x23   :  { %s3130_s26 = scalar_lea.vmem %s92_s23, 1024  ;;  %p3135_p11 = scmp.lt.s32.totalorder %s92_s23, %s92_s23 }
  0x24   :  { %p3131_p10 = scmp.ne.s32.totalorder %s92_s23, %s3130_s26  ;;  %p3136_p12 = scmp.lt.s32.totalorder %s3130_s26, %s3130_s26 }
  0x26   :  { %p3137_p13 = por %p3136_p12, %p3135_p11 }
  0x28   :  { %p3138_p0 = pnand %p3137_p13, %p3131_p10 }
  0x2a   :  { %3141 = shalt.err (!%p3138_p0)
}
  0x2b   :  { %97 = dma.hbm_to_vmem [thread:$0]  %s3725_s5, 1024, %s92_s23, [#allocation12], %s3382_s19, %s3382_s19, %s3383_s1  }
  0x2c   :  { %s3150_s3 = scalar_lea.vmem %s120_s25, 4096  ;;  %p3155_p2 = scmp.lt.s32.totalorder %s120_s25, %s120_s25 }
  0x2d   :  { %p3151_p1 = scmp.ne.s32.totalorder %s120_s25, %s3150_s3  ;;  %p3156_p3 = scmp.lt.s32.totalorder %s3150_s3, %s3150_s3 }
  0x2f   :  { %p3157_p4 = por %p3156_p3, %p3155_p2 }
  0x31   :  { %p3158_p5 = pnand %p3157_p4, %p3151_p1 }
  0x33   :  { %3161 = shalt.err (!%p3158_p5)
}
  0x34   :  { %s3386_s27 = smov 256   ;;  %s3387_s0 = smov 16  }
  0x35   :  { %125 = dma.hbm_to_vmem [thread:$0]  %s3729_s9, 4096, %s120_s25, [#allocation15], %s3386_s27, %s3386_s27, %s3387_s0  }
  0x36   :  { %s3388_s20 = smov [#allocation2]   ;;  %s3389_s22 = smov [#allocation7]  }
  0x37   :  { %s38_s21 = sshll.u32 %s3388_s20, 4  ;;  %s58_s5 = sshll.u32 %s3389_s22, 4  ;;  %s39_s21 = int_to_ptr.vmem [resolvable:$true] %s38_s21  ;;  %s59_s5 = int_to_ptr.vmem [resolvable:$true] %s58_s5 }
  0x38   :  { %s3170_s23 = scalar_lea.vmem %s39_s21, 128  ;;  %p3175_p7 = scmp.lt.s32.totalorder %s39_s21, %s39_s21 }
  0x39   :  { %p3171_p6 = scmp.ne.s32.totalorder %s39_s21, %s3170_s23  ;;  %p3176_p8 = scmp.lt.s32.totalorder %s3170_s23, %s3170_s23 }
  0x3b   :  { %p3177_p9 = por %p3176_p8, %p3175_p7 }
  0x3d   :  { %p3178_p10 = pnand %p3177_p9, %p3171_p6 }
  0x3f   :  { %3181 = shalt.err (!%p3178_p10)
}
  0x40   :  { %s3741_s28 = sld [smem:[#allocation34_spill]]  ;;  %s3190_s29 = scalar_lea.vmem %s59_s5, 128 }
  0x41   :  { %p3191_p11 = scmp.ne.s32.totalorder %s59_s5, %s3190_s29  ;;  %p3195_p12 = scmp.lt.s32.totalorder %s59_s5, %s59_s5 }
  0x42   :  { %p3196_p13 = scmp.lt.s32.totalorder %s3190_s29, %s3190_s29 }
  0x44   :  { %p3197_p0 = por %p3196_p13, %p3195_p12 }
  0x46   :  { %41 = dma.hbm_to_vmem [thread:$0]  %s3741_s28, 128, %s39_s21, [#allocation3]  }
  0x47   :  { %p3198_p1 = pnand %p3197_p0, %p3191_p11 }
  0x49   :  { %3201 = shalt.err (!%p3198_p1)
}
  0x4a   :  { %61 = dma.hbm_to_vmem [thread:$0]  %s3722_s2, 128, %s59_s5, [#allocation6]  }
  0x4b   :  { %s3390_s3 = smov [#allocation10]  }
  0x4c   :  { %s79_s30 = sshll.u32 %s3390_s3, 4  ;;  %s80_s30 = int_to_ptr.vmem [resolvable:$true] %s79_s30 }
  0x4d   :  { %s3210_s18 = scalar_lea.vmem %s80_s30, 2048  ;;  %p3215_p3 = scmp.lt.s32.totalorder %s80_s30, %s80_s30 }
  0x4e   :  { %p3211_p2 = scmp.ne.s32.totalorder %s80_s30, %s3210_s18  ;;  %p3216_p4 = scmp.lt.s32.totalorder %s3210_s18, %s3210_s18 }
  0x50   :  { %p3217_p5 = por %p3216_p4, %p3215_p3 }
  0x52   :  { %p3218_p6 = pnand %p3217_p5, %p3211_p2 }
  0x54   :  { %3221 = shalt.err (!%p3218_p6)
}
  0x55   :  { %s3391_s20 = smov 128   ;;  %s3392_s21 = smov 8  }
  0x56   :  { %85 = dma.hbm_to_vmem [thread:$0]  %s3724_s4, 2048, %s80_s30, [#allocation9], %s3391_s20, %s3391_s20, %s3392_s21  }
  0x57   :  { %s3393_s24 = smov [#allocation13]   ;;  %s3394_s2 = smov [#allocation16]  }
  0x58   :  { %s105_s26 = sshll.u32 %s3393_s24, 4  ;;  %s131_s5 = sshll.u32 %s3394_s2, 4  ;;  %s106_s26 = int_to_ptr.vmem [resolvable:$true] %s105_s26  ;;  %s132_s5 = int_to_ptr.vmem [resolvable:$true] %s131_s5 }
  0x59   :  { %s3230_s28 = scalar_lea.vmem %s106_s26, 1024  ;;  %p3235_p8 = scmp.lt.s32.totalorder %s106_s26, %s106_s26 }
  0x5a   :  { %p3231_p7 = scmp.ne.s32.totalorder %s106_s26, %s3230_s28  ;;  %p3236_p9 = scmp.lt.s32.totalorder %s3230_s28, %s3230_s28 }
  0x5c   :  { %p3237_p10 = por %p3236_p9, %p3235_p8 }
  0x5e   :  { %p3238_p11 = pnand %p3237_p10, %p3231_p7 }
  0x60   :  { %3241 = shalt.err (!%p3238_p11)
}
  0x61   :  { %111 = dma.hbm_to_vmem [thread:$0]  %s3727_s7, 1024, %s106_s26, [#allocation12], %s3382_s19, %s3382_s19, %s3383_s1  }
  0x62   :  { %s3250_s4 = scalar_lea.vmem %s132_s5, 4096  ;;  %p3255_p13 = scmp.lt.s32.totalorder %s132_s5, %s132_s5 }
  0x63   :  { %p3251_p12 = scmp.ne.s32.totalorder %s132_s5, %s3250_s4  ;;  %p3256_p0 = scmp.lt.s32.totalorder %s3250_s4, %s3250_s4 }
  0x65   :  { %p3257_p1 = por %p3256_p0, %p3255_p13 }
  0x67   :  { %p3258_p2 = pnand %p3257_p1, %p3251_p12 }
  0x69   :  { %3261 = shalt.err (!%p3258_p2)
}
  0x6a   :  { %137 = dma.hbm_to_vmem [thread:$0]  %s3730_s10, 4096, %s132_s5, [#allocation15], %s3386_s27, %s3386_s27, %s3387_s0  }
  0x6b   :  { %s3395_s30 = smov [#allocation17]  }
  0x6c   :  { %s145_s18 = sshll.u32 %s3395_s30, 4  ;;  %s146_s18 = int_to_ptr.vmem [resolvable:$true] %s145_s18 }
  0x6d   :  { %s3270_s20 = scalar_lea.vmem %s146_s18, 1024  ;;  %p3275_p4 = scmp.lt.s32.totalorder %s146_s18, %s146_s18 }
  0x6e   :  { %p3271_p3 = scmp.ne.s32.totalorder %s146_s18, %s3270_s20  ;;  %p3276_p5 = scmp.lt.s32.totalorder %s3270_s20, %s3270_s20 }
  0x70   :  { %p3277_p6 = por %p3276_p5, %p3275_p4 }
  0x72   :  { %p3278_p7 = pnand %p3277_p6, %p3271_p3 }
  0x74   :  { %3281 = shalt.err (!%p3278_p7)
}
  0x75   :  { %151 = dma.hbm_to_vmem [thread:$0]  %s3732_s12, 1024, %s146_s18, [#allocation18], %s3382_s19, %s3382_s19, %s3383_s1  }
  0x76   :  { %3362 = dma.done.wait [#allocation3], 128  }
  0x77   :  { %3363 = vsyncadd [#allocation3], 4294967168 }
  0x78   :  { %3364 = dma.done.wait [#allocation6], 256  }
  0x79   :  { %3365 = vsyncadd [#allocation6], 4294967040 }
  0x7a   :  { %3366 = dma.done.wait [#allocation9], 10240  }
  0x7b   :  { %3367 = vsyncadd [#allocation9], 4294957056 }
  0x7c   :  { %3368 = dma.done.wait [#allocation12], 2048  }
  0x7d   :  { %3369 = vsyncadd [#allocation12], 4294965248 }
  0x7e   :  { %3370 = dma.done.wait [#allocation15], 8192  }
  0x7f   :  { %3371 = vsyncadd [#allocation15], 4294959104 }
  0x80   :  { %3372 = dma.done.wait [#allocation18], 1024  }
  0x81   :  { %3373 = vsyncadd [#allocation18], 4294966272  ;;  %v3396_v0 = vmov 0.0   ;;  %vm3397_vm0 = vmmov 0   ;;  %v3398_v1 = vmov 0   ;;  %v2851_v3 = vld [vmem:[#allocation11 + $0x38] sm:$0xff]  }
  0x82   :  { %2605 = vmatprep.subr.bf16.mxu1 %v3396_v0  ;;  %2621 = vmatprep.mubr.msk.bf16.mxu1 %vm3397_vm0, %v3396_v0  ;;  %v2849_v2 = vld [vmem:[#allocation10 + $0x74] ss:$8 sps:$4 sm:$0xff]   ;;  %v2852_v4 = vld [vmem:[#allocation10 + $0x70] ss:$8 sps:$4 sm:$0xff]   ;;  %v2853_v5 = vld [vmem:[#allocation10 + $0x64] ss:$8 sps:$4 sm:$0xff]  }
  0x83   :  { %325 = vmatprep.mubr.bf16.mxu0 %v3398_v1  ;;  %293 = vmatprep.subr.bf16.mxu0 %v2849_v2  ;;  %v2855_v6 = vld [vmem:[#allocation11 + $0x30] sm:$0xff]   ;;  %v2856_v7 = vld [vmem:[#allocation10 + $0x60] ss:$8 sps:$4 sm:$0xff]   ;;  %v2861_v11 = vld [vmem:[#allocation10 + $0x44] ss:$8 sps:$4 sm:$0xff]   ;;  %vm1421_vm1 = vcmask 1041409  }
  0x84   :  { %2606 = vmatpush3.bf16.msra.mxu1 %v2851_v3  ;;  %294 = vmatpush1.bf16.msra.mxu0 %v2852_v4  ;;  %v2857_v8 = vld [vmem:[#allocation10 + $0x54] ss:$8 sps:$4 sm:$0xff]   ;;  %v2859_v9 = vld [vmem:[#allocation11 + $0x28] sm:$0xff]   ;;  %v2860_v10 = vld [vmem:[#allocation10 + $0x50] ss:$8 sps:$4 sm:$0xff]   ;;  %vm1424_vm2 = vcmask 1042434  }
  0x85   :  { %2607 = vmatprep.subr.bf16.mxu1 %v3396_v0  ;;  %295 = vmatprep.subr.bf16.mxu0 %v2853_v5  ;;  %v2863_v12 = vld [vmem:[#allocation11 + $0x20] sm:$0xff]   ;;  %v2865_v14 = vld [vmem:[#allocation10 + $0x34] ss:$8 sps:$4 sm:$0xff]   ;;  %v2868_v16 = vld [vmem:[#allocation10 + $0x30] ss:$8 sps:$4 sm:$0xff]   ;;  %vm1427_vm3 = vcmask 1043459  }
  0x86   :  { %v2864_v13 = vld [vmem:[#allocation10 + $0x40] ss:$8 sps:$4 sm:$0xff]   ;;  %v2867_v15 = vld [vmem:[#allocation11 + $0x18] sm:$0xff]   ;;  %v2869_v17 = vld [vmem:[#allocation10 + $0x24] ss:$8 sps:$4 sm:$0xff]   ;;  %vm1430_vm4 = vcmask 1044484  }
  0x87   :  { %v2871_v18 = vld [vmem:[#allocation11 + $0x10] sm:$0xff]   ;;  %v2872_v19 = vld [vmem:[#allocation10 + $0x20] ss:$8 sps:$4 sm:$0xff]   ;;  %v2877_v23 = vld [vmem:[#allocation10 + $0x4] ss:$8 sps:$4 sm:$0xff]   ;;  %vm1433_vm5 = vcmask 1045509  }
  0x88   :  { %2608 = vmatpush3.bf16.msra.mxu1 %v2855_v6  ;;  %296 = vmatpush1.bf16.msra.mxu0 %v2856_v7  ;;  %v2873_v20 = vld [vmem:[#allocation10 + $0x14] ss:$8 sps:$4 sm:$0xff]   ;;  %v2875_v21 = vld [vmem:[#allocation11 + $0x8] sm:$0xff]   ;;  %v2876_v22 = vld [vmem:[#allocation10 + $0x10] ss:$8 sps:$4 sm:$0xff]   ;;  %vm1436_vm6 = vcmask 1046534  }
  0x89   :  { %2609 = vmatprep.subr.bf16.mxu1 %v3396_v0  ;;  %297 = vmatprep.subr.bf16.mxu0 %v2857_v8  ;;  %v2879_v24 = vld [vmem:[#allocation11] sm:$0xff]   ;;  %v191_v25 = vld [vmem:[#allocation7] sm:$0xff]  ;;  %v195_v27 = vld [vmem:[#allocation2] sm:$0xff]  ;;  %vm1439_vm7 = vcmask 1047559   ;;  %s3400_s0 = smov [#allocation20]  }
  0x8a   :  { %v2880_v26 = vld [vmem:[#allocation10] ss:$8 sps:$4 sm:$0xff]   ;;  %v334_v28 = vpack.c.bf16 %v191_v25, %v191_v25  ;;  %v196_v29 = vpack.c.bf16 %v195_v27, %v195_v27  ;;  %v2881_v30 = vld [vmem:[#allocation8 + $0x38] sm:$0xff]   ;;  %v2883_v32 = vld [vmem:[#allocation8 + $0x30] sm:$0xff]   ;;  %s2283_s22 = sshll.u32 %s3400_s0, 4  ;;  %s2284_s22 = int_to_ptr.vmem [resolvable:$true] %s2283_s22 }
  0x8b   :  { %v2882_v31 = vld [vmem:[#allocation8 + $0x78] sm:$0xff]   ;;  %v2884_v33 = vld [vmem:[#allocation8 + $0x70] sm:$0xff]   ;;  %v2885_v34 = vld [vmem:[#allocation8 + $0x28] sm:$0xff]   ;;  %s3282_s23 = scalar_lea.vmem %s2284_s22, 128  ;;  %p3287_p9 = scmp.lt.s32.totalorder %s2284_s22, %s2284_s22 }
  0x8c   :  { %2610 = vmatpush3.bf16.msra.mxu1 %v2859_v9  ;;  %298 = vmatpush1.bf16.msra.mxu0 %v2860_v10  ;;  %v2886_v35 = vld [vmem:[#allocation8 + $0x68] sm:$0xff]   ;;  %v2887_v36 = vld [vmem:[#allocation8 + $0x20] sm:$0xff]   ;;  %v2889_v38 = vld [vmem:[#allocation8 + $0x18] sm:$0xff]   ;;  %v3399_v10 = vmov 1966171168   ;;  %p3283_p8 = scmp.ne.s32.totalorder %s2284_s22, %s3282_s23  ;;  %p3288_p10 = scmp.lt.s32.totalorder %s3282_s23, %s3282_s23 }
  0x8d   :  { %2611 = vmatprep.subr.bf16.mxu1 %v3396_v0  ;;  %299 = vmatprep.subr.bf16.mxu0 %v2861_v11  ;;  %v2888_v37 = vld [vmem:[#allocation8 + $0x60] sm:$0xff]   ;;  %v2890_v39 = vld [vmem:[#allocation8 + $0x58] sm:$0xff]   ;;  %v2891_v40 = vld [vmem:[#allocation8 + $0x10] sm:$0xff]   ;;  %v469_v11 = vunpack.c.l.s4 %v3399_v10 }
  0x8e   :  { %v2892_v41 = vld [vmem:[#allocation8 + $0x50] sm:$0xff]   ;;  %v2893_v42 = vld [vmem:[#allocation8 + $0x8] sm:$0xff]   ;;  %v2895_v44 = vld [vmem:[#allocation8] sm:$0xff]   ;;  %p3289_p11 = por %p3288_p10, %p3287_p9 }
  0x8f   :  { %v2894_v43 = vld [vmem:[#allocation8 + $0x48] sm:$0xff]   ;;  %v2896_v45 = vld [vmem:[#allocation8 + $0x40] sm:$0xff]   ;;  %v2898_v27 = vld [vmem:[#allocation8 + $0xf8] sm:$0xff]  }
  0x90   :  { %2612 = vmatpush3.bf16.msra.mxu1 %v2863_v12  ;;  %300 = vmatpush1.bf16.msra.mxu0 %v2864_v13  ;;  %v2352_v48 = vld [vmem:[%s3726_s6] ss:$0 sm:$0xff]  ;;  %v471_v12 = vlaneseq  ;;  %v470_v13 = vunpack.c.0.s8 %v469_v11  ;;  %v2930_v11 = vld [vmem:[#allocation8 + $0x1f8] sm:$0xff]   ;;  %p3290_p12 = pnand %p3289_p11, %p3283_p8 }
  0x91   :  { %2613 = vmatprep.subr.bf16.mxu1 %v3396_v0  ;;  %301 = vmatprep.subr.bf16.mxu0 %v2865_v14 }
  0x92   :  { %v3580_v14 = vshrl.u32 %v471_v12, 7 }
  0x94   :  { %2614 = vmatpush3.bf16.msra.mxu1 %v2867_v15  ;;  %302 = vmatpush1.bf16.msra.mxu0 %v2868_v16 }
  0x95   :  { %2615 = vmatprep.subr.bf16.mxu1 %v3396_v0  ;;  %303 = vmatprep.subr.bf16.mxu0 %v2869_v17  ;;  %v473_v17 = vsub.s32 %v470_v13, %v3580_v14  ;;  %v2931_v13 = vld [vmem:[#allocation8 + $0x1b0] sm:$0xff]  }
  0x98   :  { %2616 = vmatpush3.bf16.msra.mxu1 %v2871_v18  ;;  %304 = vmatpush1.bf16.msra.mxu0 %v2872_v19 }
  0x99   :  { %2617 = vmatprep.subr.bf16.mxu1 %v3396_v0  ;;  %305 = vmatprep.subr.bf16.mxu0 %v2873_v20 }
  0x9c   :  { %2618 = vmatpush3.bf16.msra.mxu1 %v2875_v21  ;;  %306 = vmatpush1.bf16.msra.mxu0 %v2876_v22  ;;  %v3586_v21 = vsub.s32 0, %v3580_v14 }
  0x9d   :  { %2619 = vmatprep.subr.bf16.mxu1 %v3396_v0  ;;  %307 = vmatprep.subr.bf16.mxu0 %v2877_v23 }
  0xa0   :  { %2620 = vmatpush3.bf16.msra.mxu1 %v2879_v24  ;;  %308 = vmatpush1.bf16.msra.mxu0 %v2880_v26  ;;  %v2897_v24 = vld [vmem:[#allocation8 + $0xb8] sm:$0xff]  }
  0xa1   :  { %2645 = vmatprep.subr.bf16.mxu1 %v3396_v0  ;;  %2625 = vmatprep.subr.bf16.mxu0 %v3396_v0 }
  0xa3   :  { %2622 = vmatmul.mubr.bf16.vlgmr.msra.gmra.mxu1 %v334_v28  ;;  %326 = vmatmul.mubr.bf16.vlgmr.msra.gmra.mxu0 %v196_v29  ;;  %v2899_v29 = vld [vmem:[#allocation8 + $0xb0] sm:$0xff]  }
  0xa4   :  { %2661 = vmatprep.mubr.msk.bf16.mxu1 %vm3397_vm0, %v3396_v0  ;;  %2641 = vmatprep.mubr.msk.bf16.mxu0 %vm3397_vm0, %v3396_v0 }
  0xa5   :  { %2626 = vmatpush3.bf16.msra.mxu0 %v2881_v30  ;;  %2646 = vmatpush3.bf16.msra.mxu1 %v2882_v31  ;;  %v2900_v30 = vld [vmem:[#allocation8 + $0xf0] sm:$0xff]   ;;  %v2901_v31 = vld [vmem:[#allocation8 + $0xa8] sm:$0xff]  }
  0xa6   :  { %2627 = vmatprep.subr.bf16.mxu0 %v3396_v0  ;;  %2647 = vmatprep.subr.bf16.mxu1 %v3396_v0 }
  0xa9   :  { %2628 = vmatpush3.bf16.msra.mxu0 %v2883_v32  ;;  %2648 = vmatpush3.bf16.msra.mxu1 %v2884_v33  ;;  %v2902_v32 = vld [vmem:[#allocation8 + $0xe8] sm:$0xff]   ;;  %v2903_v33 = vld [vmem:[#allocation8 + $0xa0] sm:$0xff]  }
  0xaa   :  { %2629 = vmatprep.subr.bf16.mxu0 %v3396_v0  ;;  %2649 = vmatprep.subr.bf16.mxu1 %v3396_v0 }
  0xad   :  { %2630 = vmatpush3.bf16.msra.mxu0 %v2885_v34  ;;  %2650 = vmatpush3.bf16.msra.mxu1 %v2886_v35  ;;  %v2904_v34 = vld [vmem:[#allocation8 + $0xe0] sm:$0xff]   ;;  %v2905_v35 = vld [vmem:[#allocation8 + $0x98] sm:$0xff]  }
  0xae   :  { %2631 = vmatprep.subr.bf16.mxu0 %v3396_v0  ;;  %2651 = vmatprep.subr.bf16.mxu1 %v3396_v0 }
  0xb1   :  { %2632 = vmatpush3.bf16.msra.mxu0 %v2887_v36  ;;  %2652 = vmatpush3.bf16.msra.mxu1 %v2888_v37  ;;  %v2906_v36 = vld [vmem:[#allocation8 + $0xd8] sm:$0xff]  }
  0xb2   :  { %2633 = vmatprep.subr.bf16.mxu0 %v3396_v0  ;;  %2653 = vmatprep.subr.bf16.mxu1 %v3396_v0 }
  0xb5   :  { %2634 = vmatpush3.bf16.msra.mxu0 %v2889_v38  ;;  %2654 = vmatpush3.bf16.msra.mxu1 %v2890_v39  ;;  %v2907_v38 = vld [vmem:[#allocation8 + $0x90] sm:$0xff]  }
  0xb6   :  { %2635 = vmatprep.subr.bf16.mxu0 %v3396_v0  ;;  %2655 = vmatprep.subr.bf16.mxu1 %v3396_v0  ;;  %v2908_v39 = vld [vmem:[#allocation8 + $0xd0] sm:$0xff]  }
  0xb9   :  { %2636 = vmatpush3.bf16.msra.mxu0 %v2891_v40  ;;  %2656 = vmatpush3.bf16.msra.mxu1 %v2892_v41  ;;  %v2909_v41 = vld [vmem:[#allocation8 + $0x88] sm:$0xff]  }
  0xba   :  { %2637 = vmatprep.subr.bf16.mxu0 %v3396_v0  ;;  %2657 = vmatprep.subr.bf16.mxu1 %v3396_v0 }
  0xbd   :  { %2638 = vmatpush3.bf16.msra.mxu0 %v2893_v42  ;;  %2658 = vmatpush3.bf16.msra.mxu1 %v2894_v43  ;;  %v2910_v42 = vld [vmem:[#allocation8 + $0xc8] sm:$0xff]  }
  0xbe   :  { %2639 = vmatprep.subr.bf16.mxu0 %v3396_v0  ;;  %2659 = vmatprep.subr.bf16.mxu1 %v3396_v0 }
  0xc1   :  { %2640 = vmatpush3.bf16.msra.mxu0 %v2895_v44  ;;  %2660 = vmatpush3.bf16.msra.mxu1 %v2896_v45  ;;  %v2911_v44 = vld [vmem:[#allocation8 + $0x80] sm:$0xff]  }
  0xc2   :  { %2665 = vmatprep.subr.bf16.mxu0 %v3396_v0  ;;  %2685 = vmatprep.subr.bf16.mxu1 %v3396_v0 }
 0x163   :  { %v433_v46 = vpop.f32.mrf.mxu1  ;;  %v327_v47 = vpop.f32.mrf.mxu0 }
 0x164   :  { %v439_v49 = vadd.f32 %v433_v46, %v327_v47  ;;  %v2912_v46 = vld [vmem:[#allocation8 + $0xc0] sm:$0xff]  }
 0x165   :  { %v2623_v50 = vpop.f32.mrf.mxu1  ;;  %v3578_v51 = vpop.f32.mrf.mxu0 }
 0x166   :  { %v447_v52 = vadd.f32 %v2352_v48, %v439_v49  ;;  %v2913_v48 = vld [vmem:[#allocation8 + $0x138] sm:$0xff]  }
 0x167   :  { %v436_v53 = vpop.f32.mrf.mxu1  ;;  %v331_v54 = vpop.f32.mrf.mxu0  ;;  %v2914_v50 = vld [vmem:[#allocation8 + $0x178] sm:$0xff]  }
 0x168   :  { %v448_v55 = vrot.slane %v447_v52, 4  ;;  %v2915_v53 = vld [vmem:[#allocation8 + $0x130] sm:$0xff]  }
 0x169   :  { %v2624_v56 = vpop.f32.mrf.mxu1  ;;  %v332_v57 = vpop.f32.mrf.mxu0  ;;  %v2916_v54 = vld [vmem:[#allocation8 + $0x170] sm:$0xff]  }
 0x16a   :  { %v449_v58 = vmax.f32 %v447_v52, %v448_v55  ;;  %v2917_v55 = vld [vmem:[#allocation8 + $0x128] sm:$0xff]   ;;  %v2919_v57 = vld [vmem:[#allocation8 + $0x120] sm:$0xff]  }
 0x16b   :  { %v2918_v56 = vld [vmem:[#allocation8 + $0x168] sm:$0xff]  }
 0x16c   :  { %v450_v59 = vrot.slane %v449_v58, 2 }
 0x16e   :  { %v451_v60 = vmax.f32 %v449_v58, %v450_v59  ;;  %v2920_v58 = vld [vmem:[#allocation8 + $0x160] sm:$0xff]   ;;  %v2921_v59 = vld [vmem:[#allocation8 + $0x118] sm:$0xff]  }
 0x170   :  { %v452_v61 = vrot.slane %v451_v60, 1 }
 0x172   :  { %v453_v62 = vmax.f32 %v451_v60, %v452_v61  ;;  %v2922_v60 = vld [vmem:[#allocation8 + $0x158] sm:$0xff]   ;;  %v2923_v61 = vld [vmem:[#allocation8 + $0x110] sm:$0xff]  }
 0x174   :  { %v454_v63 = vsub.f32 %v447_v52, %v453_v62  ;;  %v2924_v62 = vld [vmem:[#allocation8 + $0x150] sm:$0xff]  }
 0x176   :  { %v455_v2 = vmul.f32 1.442695, %v454_v63 }
 0x178   :  { %3057 = vpow2.f32 %v455_v2  ;;  %v2925_v2 = vld [vmem:[#allocation8 + $0x108] sm:$0xff]  }
 0x185   :  { %v3058_v3 = vpop.eup %3057 }
 0x186   :  { %v457_v4 = vrot.slane %v3058_v3, 4 }
 0x188   :  { %v458_v5 = vadd.f32 %v3058_v3, %v457_v4 }
 0x18a   :  { %v459_v6 = vrot.slane %v458_v5, 2 }
 0x18c   :  { %v460_v7 = vadd.f32 %v459_v6, %v458_v5  ;;  %v2927_v5 = vld [vmem:[#allocation8 + $0x100] sm:$0xff]  }
 0x18e   :  { %v461_v8 = vrot.slane %v460_v7, 1 }
 0x190   :  { %v462_v9 = vadd.f32 %v461_v8, %v460_v7  ;;  %v2928_v7 = vld [vmem:[#allocation8 + $0x140] sm:$0xff]  }
 0x192   :  { %3059 = vrcp.f32 %v462_v9  ;;  %v2929_v9 = vld [vmem:[#allocation8 + $0x1b8] sm:$0xff]  }
 0x19f   :  { %v3060_v15 = vpop.eup %3059 }
 0x1a0   :  { %v464_v16 = vmul.f32 %v3060_v15, %v3058_v3  ;;  %v2926_v3 = vld [vmem:[#allocation8 + $0x148] sm:$0xff]   ;;  %v2932_v15 = vld [vmem:[#allocation8 + $0x1f0] sm:$0xff]  }
 0x1a2   :  { %v466_v18 = vpack.c.bf16 %v464_v16, %v464_v16  ;;  %465 = vst [vmem:[#allocation20] sm:$0xff] %v464_v16  ;;  %v2933_v16 = vld [vmem:[#allocation8 + $0x1a8] sm:$0xff]  }
 0x1a4   :  { %v474_v19 = vrot.slane %v466_v18, %v473_v17  ;;  %v2935_v18 = vld [vmem:[#allocation8 + $0x1a0] sm:$0xff]  }
 0x1a6   :  { %v3583_v20 = vrot.slane %v474_v19, %v473_v17  ;;  %v475_v37 = vcombine.high %v474_v19, %v474_v19  ;;  %v2936_v19 = vld [vmem:[#allocation8 + $0x1e0] sm:$0xff]  }
 0x1a8   :  { %v2353_v22 = vpack.i.b16 %v3583_v20, %v3583_v20  ;;  %v493_v23 = vunpack.i.h.s16 %v3583_v20  ;;  %v3607_v40 = vrot.slane %v475_v37, %v473_v17  ;;  %v490_v63 = vcombine.high %v3583_v20, %v3583_v20  ;;  %v2934_v17 = vld [vmem:[#allocation8 + $0x1e8] sm:$0xff]   ;;  %v2937_v20 = vld [vmem:[#allocation8 + $0x198] sm:$0xff]  }
 0x1a9   :  { %v2947_v37 = vld [vmem:[#allocation13 + $0x28] sm:$0xff]  }
 0x1aa   :  { %v632_v25 = vrot.slane %v2353_v22, %v3586_v21  ;;  %v722_v26 = vpack.i.b16 %v493_v23, %v493_v23  ;;  %v495_v43 = vunpack.i.h.s16 %v3607_v40  ;;  %v2370_v45 = vpack.i.b16 %v3607_v40, %v3607_v40  ;;  %v2938_v22 = vld [vmem:[#allocation8 + $0x1d8] sm:$0xff]   ;;  %v2939_v23 = vld [vmem:[#allocation8 + $0x190] sm:$0xff]  }
 0x1ab   :  { %v497_v4 = vunpack.i.h.s16 %v490_v63  ;;  %v2387_v6 = vpack.i.b16 %v490_v63, %v490_v63  ;;  %v2986_v63 = vld [vmem:[#allocation16 + $0x20] ss:$16 sps:$4 sm:$0xff]  }
 0x1ac   :  { %2642 = vmatmul.mubr.bf16.vlgmr.msra.gmra.mxu0 %v632_v25  ;;  %v726_v28 = vrot.slane %v722_v26, %v3586_v21  ;;  %v910_v47 = vpack.i.b16 %v495_v43, %v495_v43  ;;  %v820_v49 = vrot.slane %v2370_v45, %v3586_v21  ;;  %v491_v25 = vcombine.high %v3607_v40, %v3607_v40  ;;  %v2941_v26 = vld [vmem:[#allocation8 + $0x188] sm:$0xff]   ;;  %v2950_v40 = vld [vmem:[#allocation13 + $0x10] sm:$0xff]  }
 0x1ad   :  { %2666 = vmatpush3.bf16.msra.mxu0 %v2897_v24  ;;  %2681 = vmatprep.mubr.msk.bf16.mxu0 %vm3397_vm0, %v3396_v0  ;;  %v1098_v8 = vpack.i.b16 %v497_v4, %v497_v4  ;;  %v1008_v10 = vrot.slane %v2387_v6, %v3586_v21  ;;  %v2940_v24 = vld [vmem:[#allocation8 + $0x1d0] sm:$0xff]  }
 0x1ae   :  { %2662 = vmatmul.mubr.bf16.vlgmr.msra.gmra.mxu1 %v726_v28  ;;  %2667 = vmatprep.subr.bf16.mxu0 %v3396_v0  ;;  %v914_v52 = vrot.slane %v910_v47, %v3586_v21  ;;  %v499_v28 = vunpack.i.h.s16 %v491_v25  ;;  %v2953_v43 = vld [vmem:[#allocation16 + $0xe0] ss:$16 sps:$4 sm:$0xff]   ;;  %v2958_v45 = vld [vmem:[#allocation16 + $0xc4] ss:$16 sps:$4 sm:$0xff]  }
 0x1af   :  { %2686 = vmatpush3.bf16.msra.mxu1 %v2898_v27  ;;  %2701 = vmatprep.mubr.msk.bf16.mxu1 %vm3397_vm0, %v3396_v0  ;;  %v1102_v12 = vrot.slane %v1098_v8, %v3586_v21  ;;  %v2942_v27 = vld [vmem:[#allocation8 + $0x1c8] sm:$0xff]   ;;  %v2956_v47 = vld [vmem:[#allocation16 + $0xc0] ss:$16 sps:$4 sm:$0xff]   ;;  %v2994_v4 = vld [vmem:[#allocation16 + $0x4] ss:$16 sps:$4 sm:$0xff]  }
 0x1b0   :  { %2687 = vmatprep.subr.bf16.mxu1 %v3396_v0 }
 0x1b1   :  { %2668 = vmatpush3.bf16.msra.mxu0 %v2899_v29  ;;  %v2943_v29 = vld [vmem:[#allocation8 + $0x180] sm:$0xff]  }
 0x1b2   :  { %2669 = vmatprep.subr.bf16.mxu0 %v3396_v0 }
 0x1b3   :  { %2688 = vmatpush3.bf16.msra.mxu1 %v2900_v30  ;;  %v2404_v30 = vpack.i.b16 %v491_v25, %v491_v25  ;;  %v3027_v25 = vld [vmem:[#allocation14 + $0x64] ss:$16 sps:$4 sm:$0xff]  }
 0x1b4   :  { %2689 = vmatprep.subr.bf16.mxu1 %v3396_v0 }
 0x1b5   :  { %2670 = vmatpush3.bf16.msra.mxu0 %v2901_v31  ;;  %v2944_v31 = vld [vmem:[#allocation8 + $0x1c0] sm:$0xff]  }
 0x1b6   :  { %2671 = vmatprep.subr.bf16.mxu0 %v3396_v0 }
 0x1b7   :  { %2690 = vmatpush3.bf16.msra.mxu1 %v2902_v32  ;;  %v1286_v32 = vpack.i.b16 %v499_v28, %v499_v28  ;;  %v3031_v28 = vld [vmem:[#allocation14 + $0x40] ss:$16 sps:$4 sm:$0xff]  }
 0x1b8   :  { %2691 = vmatprep.subr.bf16.mxu1 %v3396_v0 }
 0x1b9   :  { %2672 = vmatpush3.bf16.msra.mxu0 %v2903_v33  ;;  %v1196_v33 = vrot.slane %v2404_v30, %v3586_v21 }
 0x1ba   :  { %2673 = vmatprep.subr.bf16.mxu0 %v3396_v0 }
 0x1bb   :  { %2692 = vmatpush3.bf16.msra.mxu1 %v2904_v34  ;;  %v1290_v34 = vrot.slane %v1286_v32, %v3586_v21 }
 0x1bc   :  { %2693 = vmatprep.subr.bf16.mxu1 %v3396_v0 }
 0x1bd   :  { %2674 = vmatpush3.bf16.msra.mxu0 %v2905_v35  ;;  %v2945_v35 = vld [vmem:[#allocation13 + $0x38] sm:$0xff]  }
 0x1be   :  { %2675 = vmatprep.subr.bf16.mxu0 %v3396_v0 }
 0x1bf   :  { %2694 = vmatpush3.bf16.msra.mxu1 %v2906_v36  ;;  %v2946_v36 = vld [vmem:[#allocation13 + $0x30] sm:$0xff]  }
 0x1c0   :  { %2695 = vmatprep.subr.bf16.mxu1 %v3396_v0 }
 0x1c1   :  { %2676 = vmatpush3.bf16.msra.mxu0 %v2907_v38  ;;  %v2948_v38 = vld [vmem:[#allocation13 + $0x20] sm:$0xff]  }
 0x1c2   :  { %2677 = vmatprep.subr.bf16.mxu0 %v3396_v0 }
 0x1c3   :  { %2696 = vmatpush3.bf16.msra.mxu1 %v2908_v39  ;;  %v2949_v39 = vld [vmem:[#allocation13 + $0x18] sm:$0xff]  }
 0x1c4   :  { %2697 = vmatprep.subr.bf16.mxu1 %v3396_v0 }
 0x1c5   :  { %2678 = vmatpush3.bf16.msra.mxu0 %v2909_v41  ;;  %v2951_v41 = vld [vmem:[#allocation13 + $0x8] sm:$0xff]  }
 0x1c6   :  { %2679 = vmatprep.subr.bf16.mxu0 %v3396_v0 }
 0x1c7   :  { %2698 = vmatpush3.bf16.msra.mxu1 %v2910_v42  ;;  %v2952_v42 = vld [vmem:[#allocation13] sm:$0xff]  }
 0x1c8   :  { %2699 = vmatprep.subr.bf16.mxu1 %v3396_v0 }
 0x1c9   :  { %2680 = vmatpush3.bf16.msra.mxu0 %v2911_v44  ;;  %v2955_v44 = vld [vmem:[#allocation16 + $0xe4] ss:$16 sps:$4 sm:$0xff]  }
 0x1ca   :  { %2705 = vmatprep.subr.bf16.mxu0 %v3396_v0 }
 0x1cb   :  { %2700 = vmatpush3.bf16.msra.mxu1 %v2912_v46  ;;  %v2961_v46 = vld [vmem:[#allocation16 + $0xec] ss:$16 sps:$4 sm:$0xff]  }
 0x1cc   :  { %2682 = vmatmul.mubr.bf16.vlgmr.msra.gmra.mxu0 %v820_v49  ;;  %2725 = vmatprep.subr.bf16.mxu1 %v3396_v0  ;;  %v2962_v49 = vld [vmem:[#allocation16 + $0xa0] ss:$16 sps:$4 sm:$0xff]  }
 0x1cd   :  { %2706 = vmatpush3.bf16.msra.mxu0 %v2913_v48  ;;  %2721 = vmatprep.mubr.msk.bf16.mxu0 %vm3397_vm0, %v3396_v0  ;;  %v2964_v48 = vld [vmem:[#allocation16 + $0xa4] ss:$16 sps:$4 sm:$0xff]  }
 0x1ce   :  { %2702 = vmatmul.mubr.bf16.vlgmr.msra.gmra.mxu1 %v914_v52  ;;  %2707 = vmatprep.subr.bf16.mxu0 %v3396_v0  ;;  %v2968_v52 = vld [vmem:[#allocation16 + $0x80] ss:$16 sps:$4 sm:$0xff]  }
 0x1cf   :  { %2726 = vmatpush3.bf16.msra.mxu1 %v2914_v50  ;;  %2741 = vmatprep.mubr.msk.bf16.mxu1 %vm3397_vm0, %v3396_v0  ;;  %v2970_v50 = vld [vmem:[#allocation16 + $0x84] ss:$16 sps:$4 sm:$0xff]  }
 0x1d0   :  { %2727 = vmatprep.subr.bf16.mxu1 %v3396_v0 }
 0x1d1   :  { %2708 = vmatpush3.bf16.msra.mxu0 %v2915_v53  ;;  %v2976_v53 = vld [vmem:[#allocation16 + $0x64] ss:$16 sps:$4 sm:$0xff]  }
 0x1d2   :  { %2709 = vmatprep.subr.bf16.mxu0 %v3396_v0 }
 0x1d3   :  { %2728 = vmatpush3.bf16.msra.mxu1 %v2916_v54  ;;  %v2974_v54 = vld [vmem:[#allocation16 + $0x60] ss:$16 sps:$4 sm:$0xff]  }
 0x1d4   :  { %2729 = vmatprep.subr.bf16.mxu1 %v3396_v0 }
 0x1d5   :  { %2710 = vmatpush3.bf16.msra.mxu0 %v2917_v55  ;;  %v2982_v55 = vld [vmem:[#allocation16 + $0x44] ss:$16 sps:$4 sm:$0xff]  }
 0x1d6   :  { %2711 = vmatprep.subr.bf16.mxu0 %v3396_v0 }
 0x1d7   :  { %2730 = vmatpush3.bf16.msra.mxu1 %v2918_v56  ;;  %v2980_v56 = vld [vmem:[#allocation16 + $0x40] ss:$16 sps:$4 sm:$0xff]  }
 0x1d8   :  { %2731 = vmatprep.subr.bf16.mxu1 %v3396_v0 }
 0x1d9   :  { %2712 = vmatpush3.bf16.msra.mxu0 %v2919_v57 }
 0x1da   :  { %2713 = vmatprep.subr.bf16.mxu0 %v3396_v0 }
 0x1db   :  { %2732 = vmatpush3.bf16.msra.mxu1 %v2920_v58  ;;  %v2988_v58 = vld [vmem:[#allocation16 + $0x24] ss:$16 sps:$4 sm:$0xff]  }
 0x1dc   :  { %2733 = vmatprep.subr.bf16.mxu1 %v3396_v0 }
 0x1dd   :  { %2714 = vmatpush3.bf16.msra.mxu0 %v2921_v59 }
 0x1de   :  { %2715 = vmatprep.subr.bf16.mxu0 %v3396_v0 }
 0x1df   :  { %2734 = vmatpush3.bf16.msra.mxu1 %v2922_v60 }
 0x1e0   :  { %2735 = vmatprep.subr.bf16.mxu1 %v3396_v0 }
 0x1e1   :  { %2716 = vmatpush3.bf16.msra.mxu0 %v2923_v61 }
 0x1e2   :  { %2717 = vmatprep.subr.bf16.mxu0 %v3396_v0 }
 0x1e3   :  { %2736 = vmatpush3.bf16.msra.mxu1 %v2924_v62 }
 0x1e4   :  { %2737 = vmatprep.subr.bf16.mxu1 %v3396_v0 }
 0x1e5   :  { %2718 = vmatpush3.bf16.msra.mxu0 %v2925_v2 }
 0x1e6   :  { %2719 = vmatprep.subr.bf16.mxu0 %v3396_v0 }
 0x1e7   :  { %2738 = vmatpush3.bf16.msra.mxu1 %v2926_v3 }
 0x1e8   :  { %2739 = vmatprep.subr.bf16.mxu1 %v3396_v0 }
 0x1e9   :  { %2720 = vmatpush3.bf16.msra.mxu0 %v2927_v5 }
 0x1ea   :  { %2745 = vmatprep.subr.bf16.mxu0 %v3396_v0 }
 0x1eb   :  { %2740 = vmatpush3.bf16.msra.mxu1 %v2928_v7 }
 0x1ec   :  { %2722 = vmatmul.mubr.bf16.vlgmr.msra.gmra.mxu0 %v1008_v10  ;;  %2765 = vmatprep.subr.bf16.mxu1 %v3396_v0  ;;  %v2992_v10 = vld [vmem:[#allocation16] ss:$16 sps:$4 sm:$0xff]  }
 0x1ed   :  { %2746 = vmatpush3.bf16.msra.mxu0 %v2929_v9  ;;  %2761 = vmatprep.mubr.msk.bf16.mxu0 %vm3397_vm0, %v3396_v0 }
 0x1ee   :  { %2742 = vmatmul.mubr.bf16.vlgmr.msra.gmra.mxu1 %v1102_v12  ;;  %2747 = vmatprep.subr.bf16.mxu0 %v3396_v0 }
 0x1ef   :  { %2766 = vmatpush3.bf16.msra.mxu1 %v2930_v11  ;;  %2781 = vmatprep.mubr.msk.bf16.mxu1 %vm3397_vm0, %v3396_v0  ;;  %v189_v11 = vld [vmem:[#allocation5] sm:$0xff] }
 0x1f0   :  { %2767 = vmatprep.subr.bf16.mxu1 %v3396_v0 }
 0x1f1   :  { %2748 = vmatpush3.bf16.msra.mxu0 %v2931_v13 }
 0x1f2   :  { %2749 = vmatprep.subr.bf16.mxu0 %v3396_v0 }
 0x1f3   :  { %2768 = vmatpush3.bf16.msra.mxu1 %v2932_v15  ;;  %v3003_v15 = vld [vmem:[#allocation14 + $0xe4] ss:$16 sps:$4 sm:$0xff]  }
 0x1f4   :  { %2769 = vmatprep.subr.bf16.mxu1 %v3396_v0 }
 0x1f5   :  { %2750 = vmatpush3.bf16.msra.mxu0 %v2933_v16  ;;  %v3677_v16 = vpack.c.bf16 %v189_v11, %v189_v11 }
 0x1f6   :  { %2751 = vmatprep.subr.bf16.mxu0 %v3396_v0 }
 0x1f7   :  { %2770 = vmatpush3.bf16.msra.mxu1 %v2934_v17  ;;  %v3001_v17 = vld [vmem:[#allocation14 + $0xe0] ss:$16 sps:$4 sm:$0xff]  }
 0x1f8   :  { %2771 = vmatprep.subr.bf16.mxu1 %v3396_v0 }
 0x1f9   :  { %2752 = vmatpush3.bf16.msra.mxu0 %v2935_v18  ;;  %v3009_v18 = vld [vmem:[#allocation14 + $0xc4] ss:$16 sps:$4 sm:$0xff]  }
 0x1fa   :  { %2753 = vmatprep.subr.bf16.mxu0 %v3396_v0 }
 0x1fb   :  { %2772 = vmatpush3.bf16.msra.mxu1 %v2936_v19  ;;  %v3007_v19 = vld [vmem:[#allocation14 + $0xc0] ss:$16 sps:$4 sm:$0xff]  }
 0x1fc   :  { %2773 = vmatprep.subr.bf16.mxu1 %v3396_v0 }
 0x1fd   :  { %2754 = vmatpush3.bf16.msra.mxu0 %v2937_v20  ;;  %v3015_v20 = vld [vmem:[#allocation14 + $0xa4] ss:$16 sps:$4 sm:$0xff]  }
 0x1fe   :  { %2755 = vmatprep.subr.bf16.mxu0 %v3396_v0 }
 0x1ff   :  { %2774 = vmatpush3.bf16.msra.mxu1 %v2938_v22  ;;  %v3013_v22 = vld [vmem:[#allocation14 + $0xa0] ss:$16 sps:$4 sm:$0xff]  }
 0x200   :  { %2775 = vmatprep.subr.bf16.mxu1 %v3396_v0 }
 0x201   :  { %2756 = vmatpush3.bf16.msra.mxu0 %v2939_v23  ;;  %v3021_v23 = vld [vmem:[#allocation14 + $0x84] ss:$16 sps:$4 sm:$0xff]  }
 0x202   :  { %2757 = vmatprep.subr.bf16.mxu0 %v3396_v0 }
 0x203   :  { %2776 = vmatpush3.bf16.msra.mxu1 %v2940_v24  ;;  %v3019_v24 = vld [vmem:[#allocation14 + $0x80] ss:$16 sps:$4 sm:$0xff]  }
 0x204   :  { %2777 = vmatprep.subr.bf16.mxu1 %v3396_v0 }
 0x205   :  { %2758 = vmatpush3.bf16.msra.mxu0 %v2941_v26  ;;  %v3025_v26 = vld [vmem:[#allocation14 + $0x60] ss:$16 sps:$4 sm:$0xff]  }
 0x206   :  { %2759 = vmatprep.subr.bf16.mxu0 %v3396_v0 }
 0x207   :  { %2778 = vmatpush3.bf16.msra.mxu1 %v2942_v27  ;;  %v3033_v27 = vld [vmem:[#allocation14 + $0x44] ss:$16 sps:$4 sm:$0xff]  }
 0x208   :  { %2779 = vmatprep.subr.bf16.mxu1 %v3396_v0 }
 0x209   :  { %2760 = vmatpush3.bf16.msra.mxu0 %v2943_v29 }
 0x20a   :  { %2785 = vmatprep.subr.bf16.mxu0 %v3396_v0 }
 0x20b   :  { %2780 = vmatpush3.bf16.msra.mxu1 %v2944_v31 }
 0x20c   :  { %2762 = vmatmul.mubr.bf16.vlgmr.msra.gmra.mxu0 %v1196_v33  ;;  %1767 = vmatprep.subr.bf16.mxu1 %v2955_v44 }
 0x20d   :  { %2801 = vmatprep.mubr.msk.bf16.mxu0 %vm3397_vm0, %v3396_v0  ;;  %2786 = vmatpush3.bf16.msra.mxu0 %v2945_v35 }
 0x20e   :  { %2782 = vmatmul.mubr.bf16.vlgmr.msra.gmra.mxu1 %v1290_v34  ;;  %2787 = vmatprep.subr.bf16.mxu0 %v3396_v0 }
 0x20f   :  { %1799 = vmatprep.mubr.bf16.mxu1 %v3398_v1  ;;  %1768 = vmatpush1.bf16.msra.mxu1 %v2953_v43 }
 0x210   :  { %1769 = vmatprep.subr.bf16.mxu1 %v2958_v45 }
 0x211   :  { %2788 = vmatpush3.bf16.msra.mxu0 %v2946_v36 }
 0x212   :  { %2789 = vmatprep.subr.bf16.mxu0 %v3396_v0 }
 0x213   :  { %1770 = vmatpush1.bf16.msra.mxu1 %v2956_v47 }
 0x214   :  { %1771 = vmatprep.subr.bf16.mxu1 %v2964_v48 }
 0x215   :  { %2790 = vmatpush3.bf16.msra.mxu0 %v2947_v37 }
 0x216   :  { %2791 = vmatprep.subr.bf16.mxu0 %v3396_v0 }
 0x217   :  { %1772 = vmatpush1.bf16.msra.mxu1 %v2962_v49 }
 0x218   :  { %1773 = vmatprep.subr.bf16.mxu1 %v2970_v50 }
 0x219   :  { %2792 = vmatpush3.bf16.msra.mxu0 %v2948_v38 }
 0x21a   :  { %2793 = vmatprep.subr.bf16.mxu0 %v3396_v0 }
 0x21b   :  { %1774 = vmatpush1.bf16.msra.mxu1 %v2968_v52 }
 0x21c   :  { %1775 = vmatprep.subr.bf16.mxu1 %v2976_v53 }
 0x21d   :  { %2794 = vmatpush3.bf16.msra.mxu0 %v2949_v39 }
 0x21e   :  { %2795 = vmatprep.subr.bf16.mxu0 %v3396_v0 }
 0x21f   :  { %1776 = vmatpush1.bf16.msra.mxu1 %v2974_v54 }
 0x220   :  { %1777 = vmatprep.subr.bf16.mxu1 %v2982_v55 }
 0x221   :  { %2796 = vmatpush3.bf16.msra.mxu0 %v2950_v40 }
 0x222   :  { %2797 = vmatprep.subr.bf16.mxu0 %v3396_v0 }
 0x223   :  { %1778 = vmatpush1.bf16.msra.mxu1 %v2980_v56 }
 0x224   :  { %1779 = vmatprep.subr.bf16.mxu1 %v2988_v58 }
 0x225   :  { %2798 = vmatpush3.bf16.msra.mxu0 %v2951_v41 }
 0x226   :  { %2799 = vmatprep.subr.bf16.mxu0 %v3396_v0 }
 0x227   :  { %1780 = vmatpush1.bf16.msra.mxu1 %v2986_v63 }
 0x228   :  { %1781 = vmatprep.subr.bf16.mxu1 %v2994_v4 }
 0x229   :  { %2800 = vmatpush3.bf16.msra.mxu0 %v2952_v42 }
 0x22a   :  { %1808 = vmatprep.subr.bf16.mxu0 %v2961_v46 }
 0x22b   :  { %1782 = vmatpush1.bf16.msra.mxu1 %v2992_v10 }
 0x22c   :  { %2009 = vmatprep.subr.bf16.mxu1 %v3003_v15 }
 0x22e   :  { %1800 = vmatmul.mubr.bf16.vlgmr.msra.gmra.mxu1 %v3677_v16 }
 0x22f   :  { %2010 = vmatpush1.bf16.msra.mxu1 %v3001_v17  ;;  %2041 = vmatprep.mubr.bf16.mxu1 %v3398_v1 }
 0x230   :  { %2011 = vmatprep.subr.bf16.mxu1 %v3009_v18  ;;  %v2959_v18 = vld [vmem:[#allocation16 + $0xe8] ss:$16 sps:$4 sm:$0xff]  }
 0x233   :  { %2012 = vmatpush1.bf16.msra.mxu1 %v3007_v19 }
 0x234   :  { %2013 = vmatprep.subr.bf16.mxu1 %v3015_v20  ;;  %v2967_v20 = vld [vmem:[#allocation16 + $0xcc] ss:$16 sps:$4 sm:$0xff]  }
 0x237   :  { %2014 = vmatpush1.bf16.msra.mxu1 %v3013_v22  ;;  %v2965_v22 = vld [vmem:[#allocation16 + $0xc8] ss:$16 sps:$4 sm:$0xff]  }
 0x238   :  { %2015 = vmatprep.subr.bf16.mxu1 %v3021_v23  ;;  %v2973_v23 = vld [vmem:[#allocation16 + $0xac] ss:$16 sps:$4 sm:$0xff]  }
 0x23b   :  { %2016 = vmatpush1.bf16.msra.mxu1 %v3019_v24  ;;  %v2971_v24 = vld [vmem:[#allocation16 + $0xa8] ss:$16 sps:$4 sm:$0xff]  }
 0x23c   :  { %2017 = vmatprep.subr.bf16.mxu1 %v3027_v25  ;;  %v2979_v25 = vld [vmem:[#allocation16 + $0x8c] ss:$16 sps:$4 sm:$0xff]  }
 0x23f   :  { %2018 = vmatpush1.bf16.msra.mxu1 %v3025_v26  ;;  %v2977_v26 = vld [vmem:[#allocation16 + $0x88] ss:$16 sps:$4 sm:$0xff]  }
 0x240   :  { %2019 = vmatprep.subr.bf16.mxu1 %v3033_v27  ;;  %v2985_v27 = vld [vmem:[#allocation16 + $0x6c] ss:$16 sps:$4 sm:$0xff]  }
 0x243   :  { %2020 = vmatpush1.bf16.msra.mxu1 %v3031_v28  ;;  %v2983_v28 = vld [vmem:[#allocation16 + $0x68] ss:$16 sps:$4 sm:$0xff]  }
 0x26c   :  { %v716_v57 = vpop.f32.mrf.mxu0 }
 0x26d   :  { %v1380_v61 = vpack.c.bf16 %v716_v57, %v716_v57 }
 0x26e   :  { %v2643_v59 = vpop.f32.mrf.mxu0  ;;  %v810_v60 = vpop.f32.mrf.mxu1 }
 0x26f   :  { %v1381_v62 = vpack.c.bf16 %v810_v60, %v810_v60  ;;  %v1412_v8 = vunpack.c.l.b16 %v1380_v61 }
 0x270   :  { %v719_v2 = vpop.f32.mrf.mxu0  ;;  %v2663_v3 = vpop.f32.mrf.mxu1 }
 0x271   :  { %v1413_v5 = vunpack.c.l.b16 %v1381_v62 }
 0x272   :  { %v2644_v6 = vpop.f32.mrf.mxu0  ;;  %v813_v7 = vpop.f32.mrf.mxu1 }
 0x273   :  { %v1420_v9 = vrot.slane %v1413_v5, 7 }
 0x274   :  { %v2664_v12 = vpop.f32.mrf.mxu1 }
 0x275   :  { %v1422_v13 = vsel %vm1421_vm1, %v1420_v9, %v1412_v8 }
 0x28c   :  { %v904_v29 = vpop.f32.mrf.mxu0 }
 0x28d   :  { %v1382_v45 = vpack.c.bf16 %v904_v29, %v904_v29  ;;  %v2991_v29 = vld [vmem:[#allocation16 + $0x4c] ss:$16 sps:$4 sm:$0xff]  }
 0x28e   :  { %v2683_v30 = vpop.f32.mrf.mxu0  ;;  %v998_v31 = vpop.f32.mrf.mxu1 }
 0x28f   :  { %v1383_v46 = vpack.c.bf16 %v998_v31, %v998_v31  ;;  %v1414_v47 = vunpack.c.l.b16 %v1382_v45  ;;  %v2989_v30 = vld [vmem:[#allocation16 + $0x48] ss:$16 sps:$4 sm:$0xff]   ;;  %v2997_v31 = vld [vmem:[#allocation16 + $0x2c] ss:$16 sps:$4 sm:$0xff]  }
 0x290   :  { %v907_v32 = vpop.f32.mrf.mxu0  ;;  %v2703_v33 = vpop.f32.mrf.mxu1  ;;  %v3036_v45 = vld [vmem:[#allocation14 + $0x4c] ss:$16 sps:$4 sm:$0xff]  }
 0x291   :  { %v1415_v49 = vunpack.c.l.b16 %v1383_v46  ;;  %v1423_v52 = vrot.slane %v1414_v47, 6  ;;  %v2995_v32 = vld [vmem:[#allocation16 + $0x28] ss:$16 sps:$4 sm:$0xff]   ;;  %v3000_v33 = vld [vmem:[#allocation16 + $0xc] ss:$16 sps:$4 sm:$0xff]  }
 0x292   :  { %v2684_v34 = vpop.f32.mrf.mxu0  ;;  %v1001_v35 = vpop.f32.mrf.mxu1  ;;  %v3039_v46 = vld [vmem:[#allocation14 + $0x24] ss:$16 sps:$4 sm:$0xff]   ;;  %v3037_v47 = vld [vmem:[#allocation14 + $0x20] ss:$16 sps:$4 sm:$0xff]  }
 0x293   :  { %v1426_v54 = vrot.slane %v1415_v49, 5  ;;  %v1425_v56 = vsel %vm1424_vm2, %v1423_v52, %v1422_v13  ;;  %v2998_v34 = vld [vmem:[#allocation16 + $0x8] ss:$16 sps:$4 sm:$0xff]   ;;  %v3006_v35 = vld [vmem:[#allocation14 + $0xec] ss:$16 sps:$4 sm:$0xff]   ;;  %2021 = vmatprep.subr.bf16.mxu1 %v3039_v46 }
 0x294   :  { %v2704_v36 = vpop.f32.mrf.mxu1  ;;  %2022 = vmatpush1.bf16.msra.mxu1 %v3037_v47  ;;  %v3045_v49 = vld [vmem:[#allocation14 + $0x4] ss:$16 sps:$4 sm:$0xff]   ;;  %v3043_v52 = vld [vmem:[#allocation14] ss:$16 sps:$4 sm:$0xff]  }
 0x295   :  { %v1428_v60 = vsel %vm1427_vm3, %v1426_v54, %v1425_v56  ;;  %v3004_v36 = vld [vmem:[#allocation14 + $0xe8] ss:$16 sps:$4 sm:$0xff]   ;;  %2023 = vmatprep.subr.bf16.mxu1 %v3045_v49 }
 0x298   :  { %2024 = vmatpush1.bf16.msra.mxu1 %v3043_v52 }
 0x299   :  { %2805 = vmatprep.subr.bf16.mxu1 %v3396_v0 }
 0x2ac   :  { %v1092_v37 = vpop.f32.mrf.mxu0 }
 0x2ad   :  { %v1384_v48 = vpack.c.bf16 %v1092_v37, %v1092_v37  ;;  %v3012_v37 = vld [vmem:[#allocation14 + $0xcc] ss:$16 sps:$4 sm:$0xff]  }
 0x2ae   :  { %v2723_v38 = vpop.f32.mrf.mxu0  ;;  %v1186_v39 = vpop.f32.mrf.mxu1 }
 0x2af   :  { %v1385_v50 = vpack.c.bf16 %v1186_v39, %v1186_v39  ;;  %v1416_v53 = vunpack.c.l.b16 %v1384_v48  ;;  %v3010_v38 = vld [vmem:[#allocation14 + $0xc8] ss:$16 sps:$4 sm:$0xff]   ;;  %v3018_v39 = vld [vmem:[#allocation14 + $0xac] ss:$16 sps:$4 sm:$0xff]  }
 0x2b0   :  { %v1095_v40 = vpop.f32.mrf.mxu0  ;;  %v2743_v41 = vpop.f32.mrf.mxu1  ;;  %v3040_v48 = vld [vmem:[#allocation14 + $0x28] ss:$16 sps:$4 sm:$0xff]  }
 0x2b1   :  { %v1417_v55 = vunpack.c.l.b16 %v1385_v50  ;;  %v1429_v57 = vrot.slane %v1416_v53, 4  ;;  %v3016_v40 = vld [vmem:[#allocation14 + $0xa8] ss:$16 sps:$4 sm:$0xff]   ;;  %v3024_v41 = vld [vmem:[#allocation14 + $0x8c] ss:$16 sps:$4 sm:$0xff]  }
 0x2b2   :  { %v2724_v42 = vpop.f32.mrf.mxu0  ;;  %v1189_v43 = vpop.f32.mrf.mxu1  ;;  %v3048_v50 = vld [vmem:[#allocation14 + $0xc] ss:$16 sps:$4 sm:$0xff]   ;;  %v3046_v53 = vld [vmem:[#allocation14 + $0x8] ss:$16 sps:$4 sm:$0xff]  }
 0x2b3   :  { %v1432_v61 = vrot.slane %v1417_v55, 3  ;;  %v1431_v2 = vsel %vm1430_vm4, %v1429_v57, %v1428_v60  ;;  %v3022_v42 = vld [vmem:[#allocation14 + $0x88] ss:$16 sps:$4 sm:$0xff]   ;;  %v3030_v43 = vld [vmem:[#allocation14 + $0x6c] ss:$16 sps:$4 sm:$0xff]  }
 0x2b4   :  { %v2744_v44 = vpop.f32.mrf.mxu1 }
 0x2b5   :  { %v1434_v9 = vsel %vm1433_vm5, %v1432_v61, %v1431_v2  ;;  %v3028_v44 = vld [vmem:[#allocation14 + $0x68] ss:$16 sps:$4 sm:$0xff]  }
 0x2cc   :  { %v1280_v58 = vpop.f32.mrf.mxu0 }
 0x2cd   :  { %v1386_v59 = vpack.c.bf16 %v1280_v58, %v1280_v58 }
 0x2ce   :  { %v2763_v62 = vpop.f32.mrf.mxu0  ;;  %v1374_v63 = vpop.f32.mrf.mxu1 }
 0x2cf   :  { %v1418_v3 = vunpack.c.l.b16 %v1386_v59  ;;  %v1387_v4 = vpack.c.bf16 %v1374_v63, %v1374_v63  ;;  %v2429_v59 = vld [vmem:[%s3728_s8] ss:$0 sm:$0xff] }
 0x2d0   :  { %v1283_v5 = vpop.f32.mrf.mxu0  ;;  %v2783_v6 = vpop.f32.mrf.mxu1 }
 0x2d1   :  { %v1435_v7 = vrot.slane %v1418_v3, 2  ;;  %v1419_v8 = vunpack.c.l.b16 %v1387_v4 }
 0x2d2   :  { %v2764_v10 = vpop.f32.mrf.mxu0  ;;  %v1377_v11 = vpop.f32.mrf.mxu1 }
 0x2d3   :  { %v1437_v12 = vsel %vm1436_vm6, %v1435_v7, %v1434_v9  ;;  %v1438_v13 = vrot.slane %v1419_v8, 1  ;;  %v3049_v9 = vld [vmem:[#allocation17 + $0x38] sm:$0xff]   ;;  %v3051_v10 = vld [vmem:[#allocation17 + $0x28] sm:$0xff]   ;;  %v3052_v11 = vld [vmem:[#allocation17 + $0x20] sm:$0xff]  }
 0x2d4   :  { %v2784_v15 = vpop.f32.mrf.mxu1 }
 0x2d5   :  { %v1440_v17 = vsel %vm1439_vm7, %v1438_v13, %v1437_v12  ;;  %v3053_v12 = vld [vmem:[#allocation17 + $0x18] sm:$0xff]   ;;  %v3054_v13 = vld [vmem:[#allocation17 + $0x10] sm:$0xff]   ;;  %v3055_v15 = vld [vmem:[#allocation17 + $0x8] sm:$0xff]  }
 0x2d6   :  { %v1441_v19 = vpack.c.b16 %v1440_v17, %v1440_v17  ;;  %v3056_v17 = vld [vmem:[#allocation17] sm:$0xff]  }
 0x2d8   :  { %2802 = vmatmul.mubr.bf16.vlgmr.msra.gmra.mxu0 %v1441_v19  ;;  %v2099_v19 = vsub.s32 1, %v3580_v14 }
 0x2d9   :  { %1809 = vmatpush1.bf16.msra.mxu0 %v2959_v18  ;;  %1840 = vmatprep.mubr.bf16.mxu0 %v3398_v1  ;;  %v2091_v18 = vld [vmem:[%s3731_s11] sm:$0xf] }
 0x2da   :  { %1810 = vmatprep.subr.bf16.mxu0 %v2967_v20  ;;  %v2096_v20 = vrot.slane %v2091_v18, %v3586_v21 }
 0x2dd   :  { %1811 = vmatpush1.bf16.msra.mxu0 %v2965_v22 }
 0x2de   :  { %1812 = vmatprep.subr.bf16.mxu0 %v2973_v23 }
 0x2e1   :  { %1813 = vmatpush1.bf16.msra.mxu0 %v2971_v24 }
 0x2e2   :  { %1814 = vmatprep.subr.bf16.mxu0 %v2979_v25  ;;  %v2100_v25 = vrot.slane %v2091_v18, %v2099_v19 }
 0x2e5   :  { %1815 = vmatpush1.bf16.msra.mxu0 %v2977_v26 }
 0x2e6   :  { %1816 = vmatprep.subr.bf16.mxu0 %v2985_v27 }
 0x2e9   :  { %1817 = vmatpush1.bf16.msra.mxu0 %v2983_v28 }
 0x2ea   :  { %1818 = vmatprep.subr.bf16.mxu0 %v2991_v29 }
 0x2ed   :  { %1819 = vmatpush1.bf16.msra.mxu0 %v2989_v30 }
 0x2ee   :  { %1820 = vmatprep.subr.bf16.mxu0 %v2997_v31  ;;  %v1801_v54 = vpop.f32.mrf.mxu1 }
 0x2f0   :  { %v1803_v55 = vpop.f32.mrf.mxu1 }
 0x2f1   :  { %1821 = vmatpush1.bf16.msra.mxu0 %v2995_v32 }
 0x2f2   :  { %1822 = vmatprep.subr.bf16.mxu0 %v3000_v33  ;;  %v1805_v56 = vpop.f32.mrf.mxu1  ;;  %v2107_v33 = vsub.s32 3, %v3580_v14 }
 0x2f4   :  { %v1806_v57 = vpop.f32.mrf.mxu1 }
 0x2f5   :  { %1823 = vmatpush1.bf16.msra.mxu0 %v2998_v34 }
 0x2f6   :  { %2050 = vmatprep.subr.bf16.mxu0 %v3006_v35 }
 0x2f8   :  { %1841 = vmatmul.mubr.bf16.vlgmr.msra.gmra.mxu0 %v3677_v16  ;;  %v3034_v16 = vld [vmem:[#allocation14 + $0x48] ss:$16 sps:$4 sm:$0xff]  }
 0x2f9   :  { %2051 = vmatpush1.bf16.msra.mxu0 %v3004_v36  ;;  %2082 = vmatprep.mubr.bf16.mxu0 %v3398_v1  ;;  %v3042_v1 = vld [vmem:[#allocation14 + $0x2c] ss:$16 sps:$4 sm:$0xff]  }
 0x2fa   :  { %2052 = vmatprep.subr.bf16.mxu0 %v3012_v37  ;;  %v2108_v37 = vrot.slane %v2091_v18, %v2107_v33 }
 0x2fd   :  { %2053 = vmatpush1.bf16.msra.mxu0 %v3010_v38  ;;  %v2103_v38 = vsub.s32 2, %v3580_v14  ;;  %v3081_v14 = vld [vmem:[#allocation7] sm:$0xff] }
 0x2fe   :  { %2054 = vmatprep.subr.bf16.mxu0 %v3018_v39 }
 0x301   :  { %2055 = vmatpush1.bf16.msra.mxu0 %v3016_v40 }
 0x302   :  { %2056 = vmatprep.subr.bf16.mxu0 %v3024_v41  ;;  %v2104_v41 = vrot.slane %v2091_v18, %v2103_v38 }
 0x305   :  { %2057 = vmatpush1.bf16.msra.mxu0 %v3022_v42 }
 0x306   :  { %2058 = vmatprep.subr.bf16.mxu0 %v3030_v43 }
 0x309   :  { %2059 = vmatpush1.bf16.msra.mxu0 %v3028_v44 }
 0x30a   :  { %2060 = vmatprep.subr.bf16.mxu0 %v3036_v45 }
 0x30d   :  { %2061 = vmatpush1.bf16.msra.mxu0 %v3034_v16 }
 0x30e   :  { %2062 = vmatprep.subr.bf16.mxu0 %v3042_v1 }
 0x311   :  { %2063 = vmatpush1.bf16.msra.mxu0 %v3040_v48 }
 0x312   :  { %2064 = vmatprep.subr.bf16.mxu0 %v3048_v50 }
 0x315   :  { %2065 = vmatpush1.bf16.msra.mxu0 %v3046_v53 }
 0x398   :  { %v1525_v58 = vpop.f32.mrf.mxu0 }
 0x399   :  { %v1531_v60 = vadd.f32 %v1525_v58, %v3578_v51  ;;  %v3050_v51 = vld [vmem:[#allocation17 + $0x30] sm:$0xff]  }
 0x39a   :  { %v2803_v61 = vpop.f32.mrf.mxu0 }
 0x39b   :  { %v1539_v62 = vadd.f32 %v2429_v59, %v1531_v60  ;;  %v2497_v59 = vld [vmem:[%s3733_s13] ss:$0 sm:$0xff] }
 0x39c   :  { %v1528_v63 = vpop.f32.mrf.mxu0 }
 0x39d   :  { %v1540_v2 = vmax.f32 %v1539_v62, 0.0 }
 0x39e   :  { %v2804_v3 = vpop.f32.mrf.mxu0 }
 0x39f   :  { %v1541_v4 = vpack.c.bf16 %v1540_v2, %v1540_v2 }
 0x3a1   :  { %2042 = vmatmul.mubr.bf16.vlgmr.msra.gmra.mxu1 %v1541_v4  ;;  %2083 = vmatmul.mubr.bf16.vlgmr.msra.gmra.mxu0 %v1541_v4 }
 0x3a2   :  { %2821 = vmatprep.mubr.msk.bf16.mxu1 %vm3397_vm0, %v3396_v0  ;;  %2806 = vmatpush3.bf16.msra.mxu1 %v3049_v9 }
 0x3a3   :  { %2807 = vmatprep.subr.bf16.mxu1 %v3396_v0 }
 0x3a6   :  { %2808 = vmatpush3.bf16.msra.mxu1 %v3050_v51 }
 0x3a7   :  { %2809 = vmatprep.subr.bf16.mxu1 %v3396_v0 }
 0x3aa   :  { %2810 = vmatpush3.bf16.msra.mxu1 %v3051_v10 }
 0x3ab   :  { %2811 = vmatprep.subr.bf16.mxu1 %v3396_v0 }
 0x3ae   :  { %2812 = vmatpush3.bf16.msra.mxu1 %v3052_v11 }
 0x3af   :  { %2813 = vmatprep.subr.bf16.mxu1 %v3396_v0 }
 0x3b2   :  { %2814 = vmatpush3.bf16.msra.mxu1 %v3053_v12 }
 0x3b3   :  { %2815 = vmatprep.subr.bf16.mxu1 %v3396_v0 }
 0x3b6   :  { %2816 = vmatpush3.bf16.msra.mxu1 %v3054_v13 }
 0x3b7   :  { %2817 = vmatprep.subr.bf16.mxu1 %v3396_v0 }
 0x3b8   :  { %v1842_v5 = vpop.f32.mrf.mxu0 }
 0x3ba   :  { %v1844_v6 = vpop.f32.mrf.mxu0  ;;  %2818 = vmatpush3.bf16.msra.mxu1 %v3055_v15 }
 0x3bb   :  { %2819 = vmatprep.subr.bf16.mxu1 %v3396_v0 }
 0x3bc   :  { %v1846_v7 = vpop.f32.mrf.mxu0 }
 0x3be   :  { %v1847_v8 = vpop.f32.mrf.mxu0  ;;  %2820 = vmatpush3.bf16.msra.mxu1 %v3056_v17 }
 0x461   :  { %v2043_v22 = vpop.f32.mrf.mxu1  ;;  %v2084_v23 = vpop.f32.mrf.mxu0 }
 0x462   :  { %v2044_v24 = vadd.f32 %v2043_v22, %v1801_v54  ;;  %v2085_v40 = vadd.f32 %v2084_v23, %v1842_v5 }
 0x463   :  { %v2045_v26 = vpop.f32.mrf.mxu1  ;;  %v2086_v27 = vpop.f32.mrf.mxu0 }
 0x464   :  { %v2113_v28 = vadd.f32 %v2096_v20, %v2044_v24  ;;  %v2046_v29 = vadd.f32 %v2045_v26, %v1803_v55  ;;  %v2087_v21 = vadd.f32 %v2086_v27, %v1844_v6  ;;  %v2115_v44 = vadd.f32 %v2104_v41, %v2085_v40 }
 0x465   :  { %v2047_v30 = vpop.f32.mrf.mxu1  ;;  %v2088_v31 = vpop.f32.mrf.mxu0 }
 0x466   :  { %v2494_v0 = vmul.f32 -1.442695, %v2113_v28  ;;  %v2114_v32 = vadd.f32 %v2100_v25, %v2046_v29  ;;  %v2116_v39 = vadd.f32 %v2108_v37, %v2087_v21 }
 0x467   :  { %v2048_v34 = vpop.f32.mrf.mxu1  ;;  %v2089_v35 = vpop.f32.mrf.mxu0 }
 0x468   :  { %3061 = vpow2.f32 %v2494_v0  ;;  %v2495_v36 = vmul.f32 -1.442695, %v2114_v32  ;;  %v2496_v42 = vmul.f32 -1.442695, %v2116_v39 }
 0x46a   :  { %3063 = vpow2.f32 %v2495_v36 }
 0x46b   :  { %3065 = vpow2.f32 %v2496_v42 }
 0x475   :  { %v3062_v43 = vpop.eup %3061 }
 0x476   :  { %v2120_v45 = vadd.f32 1.0, %v3062_v43 }
 0x477   :  { %v3064_v16 = vpop.eup %3063 }
 0x478   :  { %3067 = vrcp.f32 %v2120_v45  ;;  %v2126_v46 = vadd.f32 1.0, %v3064_v16  ;;  %v3066_v1 = vpop.eup %3065 }
 0x479   :  { %3069 = vtanh.f32 %v2115_v44  ;;  %v2133_v50 = vadd.f32 1.0, %v3066_v1 }
 0x47a   :  { %3071 = vrcp.f32 %v2126_v46 }
 0x47b   :  { %3073 = vrcp.f32 %v2133_v50 }
 0x485   :  { %v3068_v47 = vpop.eup %3067 }
 0x486   :  { %v3070_v48 = vpop.eup %3069 }
 0x487   :  { %v3072_v49 = vpop.eup %3071  ;;  %v2137_v52 = vmul.f32 %v3070_v48, %v3068_v47 }
 0x488   :  { %v2136_v53 = vmul.f32 %v3081_v14, %v3072_v49  ;;  %v3074_v55 = vpop.eup %3073 }
 0x48a   :  { %v2138_v54 = vadd.f32 %v2137_v52, %v2136_v53 }
 0x48c   :  { %2266 = vst [vmem:[#allocation23] sm:$0xff] %v2138_v54  ;;  %3075 = vtanh.f32 %v2138_v54 }
 0x499   :  { %v3076_v56 = vpop.eup %3075 }
 0x49a   :  { %v2140_v57 = vmul.f32 %v3076_v56, %v3074_v55 }
 0x49c   :  { %v2141_v58 = vpack.c.bf16 %v2140_v57, %v2140_v57  ;;  %2265 = vst [vmem:[#allocation22] sm:$0xff] %v2140_v57 }
 0x49e   :  { %2822 = vmatmul.mubr.bf16.vlgmr.msra.gmra.mxu1 %v2141_v58 }
 0x55e   :  { %v2247_v60 = vpop.f32.mrf.mxu1 }
 0x55f   :  { %v2248_v61 = vadd.f32 %v2497_v59, %v2247_v60 }
 0x560   :  { %v2823_v62 = vpop.f32.mrf.mxu1 }
 0x561   :  { %2253 = vmax.xlane.f32.xlu0 %v2248_v61 }
 0x562   :  { %v2250_v63 = vpop.f32.mrf.mxu1 }
 0x564   :  { %v2824_v2 = vpop.f32.mrf.mxu1 }
 0x5ea   :  { %v2254_v3 = vpop.xlane.xlu0 %2253 }
 0x5eb   :  { %v2255_v4 = vsub.f32 %v2248_v61, %v2254_v3 }
 0x5ed   :  { %v2256_v5 = vmul.f32 1.442695, %v2255_v4 }
 0x5ef   :  { %3077 = vpow2.f32 %v2256_v5 }
 0x5fc   :  { %v3078_v6 = vpop.eup %3077 }
 0x5fd   :  { %2258 = vadd.xlane.f32.xlu0 %v3078_v6 }
 0x5fe   :  { %3293 = shalt.err (!%p3290_p12)
}
 0x5ff   :  { %2286 = dma.vmem_to_hbm [thread:$0]  %s2284_s22, 128, %s3735_s15, [#allocation21]  }
 0x600   :  { %s3401_s26 = smov [#allocation22]  }
 0x601   :  { %s2293_s2 = sshll.u32 %s3401_s26, 4  ;;  %s2294_s2 = int_to_ptr.vmem [resolvable:$true] %s2293_s2 }
 0x602   :  { %s3302_s5 = scalar_lea.vmem %s2294_s2, 128  ;;  %p3307_p0 = scmp.lt.s32.totalorder %s2294_s2, %s2294_s2 }
 0x603   :  { %p3303_p13 = scmp.ne.s32.totalorder %s2294_s2, %s3302_s5  ;;  %p3308_p1 = scmp.lt.s32.totalorder %s3302_s5, %s3302_s5 }
 0x605   :  { %p3309_p2 = por %p3308_p1, %p3307_p0 }
 0x607   :  { %p3310_p3 = pnand %p3309_p2, %p3303_p13 }
 0x609   :  { %3313 = shalt.err (!%p3310_p3)
}
 0x60a   :  { %2296 = dma.vmem_to_hbm [thread:$0]  %s2294_s2, 128, %s3736_s16, [#allocation21]  }
 0x60b   :  { %s3402_s9 = smov [#allocation23]  }
 0x60c   :  { %s2303_s4 = sshll.u32 %s3402_s9, 4  ;;  %s2304_s4 = int_to_ptr.vmem [resolvable:$true] %s2303_s4 }
 0x60d   :  { %s3322_s25 = scalar_lea.vmem %s2304_s4, 128  ;;  %p3327_p5 = scmp.lt.s32.totalorder %s2304_s4, %s2304_s4 }
 0x60e   :  { %p3323_p4 = scmp.ne.s32.totalorder %s2304_s4, %s3322_s25  ;;  %p3328_p6 = scmp.lt.s32.totalorder %s3322_s25, %s3322_s25 }
 0x610   :  { %p3329_p7 = por %p3328_p6, %p3327_p5 }
 0x612   :  { %p3330_p8 = pnand %p3329_p7, %p3323_p4 }
 0x614   :  { %3333 = shalt.err (!%p3330_p8)
}
 0x615   :  { %2306 = dma.vmem_to_hbm [thread:$0]  %s2304_s4, 128, %s3737_s17, [#allocation24]  }
 0x616   :  { %s3403_s30 = smov [#allocation19]  }
 0x617   :  { %s2273_s16 = sshll.u32 %s3403_s30, 4  ;;  %s2274_s16 = int_to_ptr.vmem [resolvable:$true] %s2273_s16 }
 0x618   :  { %s3342_s18 = scalar_lea.vmem %s2274_s16, 128  ;;  %p3347_p10 = scmp.lt.s32.totalorder %s2274_s16, %s2274_s16 }
 0x619   :  { %p3343_p9 = scmp.ne.s32.totalorder %s2274_s16, %s3342_s18  ;;  %p3348_p11 = scmp.lt.s32.totalorder %s3342_s18, %s3342_s18 }
 0x61b   :  { %p3349_p12 = por %p3348_p11, %p3347_p10 }
 0x61d   :  { %p3350_p13 = pnand %p3349_p12, %p3343_p9 }
 0x686   :  { %v2259_v7 = vpop.xlane.xlu0 %2258 }
 0x687   :  { %3079 = vlog2.f32 %v2259_v7 }
 0x694   :  { %v3080_v8 = vpop.eup %3079 }
 0x695   :  { %v2261_v9 = vmul.f32 0.6931472, %v3080_v8 }
 0x697   :  { %v2262_v51 = vadd.f32 %v2261_v9, %v2254_v3 }
 0x699   :  { %v2263_v10 = vsub.f32 %v2248_v61, %v2262_v51 }
 0x69b   :  { %2264 = vst [vmem:[#allocation19] sm:$0xff] %v2263_v10 }
 0x69c   :  { %3353 = shalt.err (!%p3350_p13)
}
 0x69d   :  { %2276 = dma.vmem_to_hbm [thread:$0]  %s2274_s16, 128, %s3734_s14, [#allocation4]  }
 0x69e   :  { %3374 = dma.done.wait [#allocation4], 128  }
 0x69f   :  { %3375 = vsyncadd [#allocation4], 4294967168 }
 0x6a0   :  { %3376 = dma.done.wait [#allocation21], 256  }
 0x6a1   :  { %3377 = vsyncadd [#allocation21], 4294967040 }
 0x6a2   :  { %3378 = dma.done.wait [#allocation24], 128  }
 0x6a3   :  { %3379 = vsyncadd [#allocation24], 4294967168 }
 0x6a4   :  { %2319 = vsyncpa [#allocation3], 1 }
 0x6a5   :  { %2320 = vsyncpa [#allocation6], 1 }
 0x6a6   :  { %2321 = vsyncpa [#allocation9], 1 }
 0x6a7   :  { %2322 = vsyncpa [#allocation12], 1 }
 0x6a8   :  { %2323 = vsyncpa [#allocation15], 1 }
 0x6a9   :  { %2324 = vsyncpa [#allocation18], 1 }
 0x6aa   :  { %2325 = vsyncpa [#allocation4], 1 }
 0x6ab   :  { %2326 = vsyncpa [#allocation21], 1 }
 0x6ac   :  { %2327 = vsyncpa [#allocation24], 1 }

</bundles_post_ra>
